<compile_context>
chip_gen: v7x
topology: tpu7x:2x2x1
jax: 0.10.0
libtpu: 0.0.40
codegen_flags: <defaults>
</compile_context>

<pallas_src>
import functools
import math

import jax
import jax.numpy as jnp
from jax.experimental import pallas as pl
from jax.experimental.pallas import tpu as pltpu

# Make the plain-JAX reference use full-precision f32 matmuls so it matches
# the in-kernel f32 MXU matmuls (kernel always uses preferred f32).
jax.config.update("jax_default_matmul_precision", "highest")


# ---------------------------------------------------------------------------
# Phase 1: one large-M MXU matmul for every gate pre-activation of the whole
# sequence:  Z = X2d @ W_fused + b_fused, with X2d = (T*B, D), W = (D, 6H).
# ---------------------------------------------------------------------------
def gates_kernel(x_ref, w_ref, b_ref, z_ref):
    z_ref[...] = (jnp.dot(x_ref[...], w_ref[...],
                          preferred_element_type=jnp.float32) + b_ref[...])


# ---------------------------------------------------------------------------
# Phase 2: the sequential recurrence.  grid=(T,), state resident in VMEM.
#   z_ref : (1, B, 6H) block of the precomputed gate pre-activations [i|f|o|q|k|v]
#   s0_ref: (B, 4H) initial packed state [h|c|n|m] (stationary input)
#   h_ref : (1, B, H) per-step h_t output block
#   s_ref : (B, 4H) packed state output, resident across the whole grid
# ---------------------------------------------------------------------------
def recurrence_kernel(z_ref, s0_ref, h_ref, s_ref, *, hidden_size):
    H = hidden_size
    t = pl.program_id(0)

    @pl.when(t == 0)
    def _():
        s_ref[...] = s0_ref[...]          # bring the initial state into the resident block

    z = z_ref[0]                          # (B, 6H)
    i_tilda = z[:, 0 * H:1 * H]
    f_tilda = z[:, 1 * H:2 * H]
    o_tilda = z[:, 2 * H:3 * H]
    q_t     = z[:, 3 * H:4 * H]
    k_t     = z[:, 4 * H:5 * H]           # 1/sqrt(H) already folded into the weight
    v_t     = z[:, 5 * H:6 * H]

    s = s_ref[...]                        # (B, 4H) packed [h | c | n | m]
    c_prev = s[:, 1 * H:2 * H]
    n_prev = s[:, 2 * H:3 * H]
    m_prev = s[:, 3 * H:4 * H]            # h_prev is unused by the torch forward

    o_t = jax.nn.sigmoid(o_tilda)

    # Stabilized exponential gating (log(exp(x)) == x, so use the tildes).
    fm = f_tilda + m_prev
    m_t = jnp.maximum(fm, i_tilda)
    # One packed (B, 2H) exp instead of two (B, H) exps: halves EUP pushes.
    e = jnp.exp(jnp.concatenate([i_tilda - m_t, fm - m_t], axis=-1))
    i_prime = e[:, 0 * H:1 * H]
    f_prime = e[:, 1 * H:2 * H]

    c_t = f_prime * c_prev + i_prime * (v_t * k_t)
    n_t = f_prime * n_prev + i_prime * k_t

    # q_t^T n_t contracted over the batch axis on the MXU; max over axis 0
    # lands the normalizer directly in (1, H) row layout (no (H,1)->(1,H)
    # relayout).  Matches torch: max_{h'} | (n^T q)[h, h'] |.
    qtn = jax.lax.dot_general(q_t, n_t, (((0,), (0,)), ((), ())),
                              preferred_element_type=jnp.float32)     # (H, H)
    denom = jnp.max(jnp.abs(qtn), axis=0, keepdims=True)              # (1, H)
    inv_denom = pl.reciprocal(denom, approx=False)                    # exact

    h_t = o_t * (c_t * q_t * inv_denom)

    h_ref[0] = h_t                                                    # (B, H), lane-dense
    # Single lane-dense (B, 4H) store of the packed next state (stays in VMEM).
    s_ref[...] = jnp.concatenate([h_t, c_t, n_t, m_t], axis=-1)


# ---------------------------------------------------------------------------
# Phase 3: fc (H -> 1) applied to all T*B rows at once (post-loop, amortized).
# ---------------------------------------------------------------------------
def fc_kernel(h_ref, w_ref, b_ref, out_ref):
    out_ref[...] = (jnp.sum(h_ref[...] * w_ref[...], axis=-1, keepdims=True)
                    + b_ref[0, 0])


@jax.jit
def _mlstm_sequence(x_seq, w_fused, b_fused, fc_w_row, fc_b, s0):
    T, B, D = x_seq.shape
    H = fc_w_row.shape[1]
    f32 = jnp.float32
    vmem = pl.BlockSpec(memory_space=pltpu.MemorySpace.VMEM)
    smem = pl.BlockSpec(memory_space=pltpu.MemorySpace.SMEM)

    # Phase 1: Z for all timesteps in one MXU pass (single block at demo sizes;
    # tile the (T*B) rows with a grid if the sequence ever outgrows VMEM).
    x2d = x_seq.reshape(T * B, D)
    z2d = pl.pallas_call(
        gates_kernel,
        out_shape=jax.ShapeDtypeStruct((T * B, 6 * H), f32),
        in_specs=[vmem, vmem, vmem],
        out_specs=vmem,
    )(x2d, w_fused, b_fused)
    z = z2d.reshape(T, B, 6 * H)

    # Phase 2: sequential recurrence, packed state VMEM-resident across grid=(T,).
    h_seq, s_final = pl.pallas_call(
        functools.partial(recurrence_kernel, hidden_size=H),
        out_shape=(
            jax.ShapeDtypeStruct((T, B, H), f32),       # h_t for every step
            jax.ShapeDtypeStruct((B, 4 * H), f32),      # final packed [h|c|n|m]
        ),
        grid=(T,),
        in_specs=[
            pl.BlockSpec((1, B, 6 * H), lambda t: (t, 0, 0)),
            pl.BlockSpec((B, 4 * H), lambda t: (0, 0)),     # stationary init state
        ],
        out_specs=(
            pl.BlockSpec((1, B, H), lambda t: (t, 0, 0)),
            pl.BlockSpec((B, 4 * H), lambda t: (0, 0)),     # resident state block
        ),
        compiler_params=pltpu.CompilerParams(
            dimension_semantics=("arbitrary",)),            # time is sequential
    )(z, s0)

    # Phase 3: fc over all timesteps at once.
    h2d = h_seq.reshape(T * B, H)
    out2d = pl.pallas_call(
        fc_kernel,
        out_shape=jax.ShapeDtypeStruct((T * B, 1), f32),
        in_specs=[vmem, vmem, smem],
        out_specs=vmem,
    )(h2d, fc_w_row, fc_b)

    return out2d.reshape(T, B, 1), h_seq, s_final


# ---------------------------------------------------------------------------
# Public wrappers
# ---------------------------------------------------------------------------
def mlstm_sequence_pallas(x_seq, packed_params, states):
    """Apply the mLSTM cell to a (T, B, D) sequence. Returns (out_seq, h_seq, s_final)."""
    s0 = pack_states(*states)
    return _mlstm_sequence(
        x_seq, packed_params["w_fused"], packed_params["b_fused"],
        packed_params["fc_w_row"], packed_params["fc_b"], s0)


def mlstm_cell_pallas(x, packed_params, states):
    """One mLSTM cell step (the exact torch-module interface): x is (B, D)."""
    H = packed_params["fc_w_row"].shape[1]
    out_seq, _, s_final = mlstm_sequence_pallas(x[None], packed_params, states)
    return out_seq[0], unpack_states(s_final, H)


def prepare_params(params):
    """One-time host-side packing: fuse gate weights/biases, fold 1/sqrt(H) into
    w_k (bias unchanged, as in torch), and lay out fc as a (1, H) row + (1, 1) bias."""
    H = params["w_i"].shape[1]
    wk_scaled = params["w_k"] / (H ** 0.5)
    w_fused = jnp.concatenate(
        [params["w_i"], params["w_f"], params["w_o"],
         params["w_q"], wk_scaled, params["w_v"]], axis=1)            # (D, 6H)
    b_fused = jnp.concatenate(
        [params["b_i"], params["b_f"], params["b_o"],
         params["b_q"], params["b_k"], params["b_v"]]).reshape(1, 6 * H)
    return {
        "w_fused": w_fused,
        "b_fused": b_fused,
        "fc_w_row": params["fc_w"].reshape(1, H),
        "fc_b": params["fc_b"].reshape(1, 1),
    }


def pack_states(h, c, n, m):
    return jnp.concatenate([h, c, n, m], axis=-1)                     # (B, 4H)


def unpack_states(s, hidden_size):
    H = hidden_size
    return (s[:, 0 * H:1 * H], s[:, 1 * H:2 * H],
            s[:, 2 * H:3 * H], s[:, 3 * H:4 * H])


# ---------------------------------------------------------------------------
# Plain-JAX reference mirroring the torch forward exactly.
# ---------------------------------------------------------------------------
def mlstm_cell_ref(x, params, states):
    h_prev, c_prev, n_prev, m_prev = states
    H = params["w_i"].shape[1]
    i_tilda = x @ params["w_i"] + params["b_i"]
    f_tilda = x @ params["w_f"] + params["b_f"]
    o_tilda = x @ params["w_o"] + params["b_o"]
    q_t = x @ params["w_q"] + params["b_q"]
    k_t = (x @ params["w_k"]) / (H ** 0.5) + params["b_k"]
    v_t = x @ params["w_v"] + params["b_v"]
    o_t = jax.nn.sigmoid(o_tilda)
    m_t = jnp.maximum(f_tilda + m_prev, i_tilda)
    i_prime = jnp.exp(i_tilda - m_t)
    f_prime = jnp.exp(f_tilda + m_prev - m_t)
    c_t = f_prime * c_prev + i_prime * (v_t * k_t)
    n_t = f_prime * n_prev + i_prime * k_t
    denom = jnp.max(jnp.abs(n_t.T @ q_t), axis=1)          # (H,)
    h_tilda = c_t * q_t / denom
    h_t = o_t * h_tilda
    out = h_t @ params["fc_w"] + params["fc_b"]
    return out, (h_t, c_t, n_t, m_t)


def mlstm_sequence_ref(x_seq, params, states):
    outs, hs = [], []
    for t in range(x_seq.shape[0]):
        out, states = mlstm_cell_ref(x_seq[t], params, states)
        outs.append(out)
        hs.append(states[0])
    return jnp.stack(outs), jnp.stack(hs), states


def make_params(key, input_size, hidden_size):
    """Deterministic init matching the torch shapes (xavier_uniform weights,
    zero gate biases, Linear-style init for fc)."""
    ks = jax.random.split(key, 8)
    xav = math.sqrt(6.0 / (input_size + hidden_size))
    params = {}
    for i, name in enumerate(["w_i", "w_f", "w_o", "w_q", "w_k", "w_v"]):
        params[name] = jax.random.uniform(
            ks[i], (input_size, hidden_size), jnp.float32, -xav, xav)
    for name in ["b_i", "b_f", "b_o", "b_q", "b_k", "b_v"]:
        params[name] = jnp.zeros((hidden_size,), jnp.float32)
    fc_bound = 1.0 / math.sqrt(hidden_size)
    params["fc_w"] = jax.random.uniform(
        ks[6], (hidden_size, 1), jnp.float32, -fc_bound, fc_bound)
    params["fc_b"] = jax.random.uniform(
        ks[7], (1,), jnp.float32, -fc_bound, fc_bound)
    return params


if __name__ == "__main__":
    T, B, input_size, hidden_size = 16, 8, 16, 32   # T*B = 128 rows for the hoisted matmul

    key = jax.random.PRNGKey(0)
    k_param, kx, kh, kc, kn = jax.random.split(key, 5)

    params = make_params(k_param, input_size, hidden_size)
    x_seq = jax.random.normal(kx, (T, B, input_size), jnp.float32)
    h0 = jax.random.normal(kh, (B, hidden_size), jnp.float32)
    c0 = jax.random.normal(kc, (B, hidden_size), jnp.float32)
    n0 = jax.random.normal(kn, (B, hidden_size), jnp.float32)
    m0 = jnp.zeros((B, hidden_size), jnp.float32)
    states0 = (h0, c0, n0, m0)

    packed_params = prepare_params(params)          # one-time packing

    # Full-sequence run: all three Pallas phases.
    out_seq, h_seq, s_final = mlstm_sequence_pallas(x_seq, packed_params, states0)
    jax.block_until_ready((out_seq, h_seq, s_final))

    # Correctness vs. a plain-JAX loop over the torch-forward reference.
    out_r, h_r, states_r = mlstm_sequence_ref(x_seq, params, states0)
    h_f, c_f, n_f, m_f = unpack_states(s_final, hidden_size)
    checks = [(out_seq, out_r), (h_seq, h_r),
              (h_f, states_r[0]), (c_f, states_r[1]),
              (n_f, states_r[2]), (m_f, states_r[3])]
    for got, want in checks:
        assert got.shape == want.shape, (got.shape, want.shape)
        assert jnp.allclose(got, want, rtol=1e-3, atol=1e-3), "sequence mismatch vs reference"

    # Single-step interface (the exact module forward) also checks out.
    out1, st1 = mlstm_cell_pallas(x_seq[0], packed_params, states0)
    out1_r, st1_r = mlstm_cell_ref(x_seq[0], params, states0)
    assert jnp.allclose(out1, out1_r, rtol=1e-3, atol=1e-3), "single-step out mismatch"
    for got, want in zip(st1, st1_r):
        assert jnp.allclose(got, want, rtol=1e-3, atol=1e-3), "single-step state mismatch"

    print("KERNEL_OK")
</pallas_src>

<mosaic_0001>
module attributes {stable_mosaic.version = 11 : i64} {
  func.func @recurrence_kernel(%arg0: i32, %arg1: memref<1x8x192xf32, #tpu.memory_space<vmem>>, %arg2: memref<8x128xf32, #tpu.memory_space<vmem>>, %arg3: memref<1x8x32xf32, #tpu.memory_space<vmem>>, %arg4: memref<8x128xf32, #tpu.memory_space<vmem>>) attributes {dimension_semantics = [#tpu.dimension_semantics<arbitrary>], iteration_bounds = array<i64: 16>, scalar_prefetch = 0 : i64, scratch_operands = 0 : i64, tpu.core_type = #tpu.core_type<tc>, window_params = [{transform_indices = @transform_0, window_bounds = array<i64: 1, 8, 192>}, {pipeline_mode = #tpu.pipeline_mode<synchronous>, transform_indices = @transform_1, window_bounds = array<i64: 8, 128>}, {transform_indices = @transform_2, window_bounds = array<i64: 1, 8, 32>}, {pipeline_mode = #tpu.pipeline_mode<synchronous>, transform_indices = @transform_3, window_bounds = array<i64: 8, 128>}]} {
    %c0_i32 = arith.constant 0 : i32
    %0 = arith.cmpi eq, %arg0, %c0_i32 : i32
    %1 = arith.extui %0 : i1 to i32
    %c0_i32_0 = arith.constant 0 : i32
    %2 = arith.cmpi ne, %1, %c0_i32_0 : i32
    scf.if %2 {
      %c0_12 = arith.constant 0 : index
      %c0_13 = arith.constant 0 : index
      %49 = vector.load %arg2[%c0_12, %c0_13] : memref<8x128xf32, #tpu.memory_space<vmem>>, vector<8x128xf32>
      %c0_14 = arith.constant 0 : index
      %c0_15 = arith.constant 0 : index
      %50 = vector.load %arg4[%c0_14, %c0_15] : memref<8x128xf32, #tpu.memory_space<vmem>>, vector<8x128xf32>
      tpu.vector_store %arg4[%c0_14, %c0_15], %49 {strides = array<i32>} : memref<8x128xf32, #tpu.memory_space<vmem>>, vector<8x128xf32>,
    } else {
    }
    %c0 = arith.constant 0 : index
    %c0_1 = arith.constant 0 : index
    %c0_2 = arith.constant 0 : index
    %3 = vector.load %arg1[%c0, %c0_1, %c0_2] : memref<1x8x192xf32, #tpu.memory_space<vmem>>, vector<1x8x192xf32>
    %4 = vector.shape_cast %3 : vector<1x8x192xf32> to vector<8x192xf32>
    %5 = vector.extract_strided_slice %4 {offsets = [0, 0], sizes = [8, 32], strides = [1, 1]} : vector<8x192xf32> to vector<8x32xf32>
    %6 = vector.extract_strided_slice %4 {offsets = [0, 32], sizes = [8, 32], strides = [1, 1]} : vector<8x192xf32> to vector<8x32xf32>
    %7 = vector.extract_strided_slice %4 {offsets = [0, 64], sizes = [8, 32], strides = [1, 1]} : vector<8x192xf32> to vector<8x32xf32>
    %8 = vector.extract_strided_slice %4 {offsets = [0, 96], sizes = [8, 32], strides = [1, 1]} : vector<8x192xf32> to vector<8x32xf32>
    %9 = vector.extract_strided_slice %4 {offsets = [0, 128], sizes = [8, 32], strides = [1, 1]} : vector<8x192xf32> to vector<8x32xf32>
    %10 = vector.extract_strided_slice %4 {offsets = [0, 160], sizes = [8, 32], strides = [1, 1]} : vector<8x192xf32> to vector<8x32xf32>
    %c0_3 = arith.constant 0 : index
    %c0_4 = arith.constant 0 : index
    %11 = vector.load %arg4[%c0_3, %c0_4] : memref<8x128xf32, #tpu.memory_space<vmem>>, vector<8x128xf32>
    %12 = vector.extract_strided_slice %11 {offsets = [0, 32], sizes = [8, 32], strides = [1, 1]} : vector<8x128xf32> to vector<8x32xf32>
    %13 = vector.extract_strided_slice %11 {offsets = [0, 64], sizes = [8, 32], strides = [1, 1]} : vector<8x128xf32> to vector<8x32xf32>
    %14 = vector.extract_strided_slice %11 {offsets = [0, 96], sizes = [8, 32], strides = [1, 1]} : vector<8x128xf32> to vector<8x32xf32>
    %15 = arith.negf %7 : vector<8x32xf32>
    %16 = math.exp %15 : vector<8x32xf32>
    %cst = arith.constant 1.000000e+00 : f32
    %17 = vector.broadcast %cst : f32 to vector<8x32xf32>
    %18 = arith.addf %17, %16 : vector<8x32xf32>
    %19 = arith.divf %17, %18 : vector<8x32xf32>
    %20 = arith.addf %6, %14 : vector<8x32xf32>
    %21 = arith.maximumf %20, %5 : vector<8x32xf32>
    %22 = arith.subf %5, %21 : vector<8x32xf32>
    %23 = arith.subf %20, %21 : vector<8x32xf32>
    %24 = tpu.concatenate %22, %23 in 1 : vector<8x32xf32>, vector<8x32xf32> -> vector<8x64xf32>
    %25 = math.exp %24 : vector<8x64xf32>
    %26 = vector.extract_strided_slice %25 {offsets = [0, 0], sizes = [8, 32], strides = [1, 1]} : vector<8x64xf32> to vector<8x32xf32>
    %27 = vector.extract_strided_slice %25 {offsets = [0, 32], sizes = [8, 32], strides = [1, 1]} : vector<8x64xf32> to vector<8x32xf32>
    %28 = arith.mulf %27, %12 : vector<8x32xf32>
    %29 = arith.mulf %10, %9 : vector<8x32xf32>
    %30 = arith.mulf %26, %29 : vector<8x32xf32>
    %31 = arith.addf %28, %30 : vector<8x32xf32>
    %32 = arith.mulf %27, %13 : vector<8x32xf32>
    %33 = arith.mulf %26, %9 : vector<8x32xf32>
    %34 = arith.addf %32, %33 : vector<8x32xf32>
    %cst_5 = arith.constant dense<0.000000e+00> : vector<32x32xf32>
    %35 = tpu.matmul %8, %34, %cst_5 {dimension_numbers = #tpu.dot_dimension_numbers<[0], [0], [1], [1], [0, 1, 1, 1], [], []>, precision = #tpu.contract_precision<fp32>} : vector<8x32xf32>, vector<8x32xf32>, vector<32x32xf32> -> vector<32x32xf32>
    %36 = math.absf %35 : vector<32x32xf32>
    %cst_6 = arith.constant dense<0xFF800000> : vector<32xf32>
    %37 = vector.multi_reduction <maximumf>, %36, %cst_6 [0] : vector<32x32xf32> to vector<32xf32>
    %38 = vector.shape_cast %37 : vector<32xf32> to vector<1x32xf32>
    %39 = tpu.reciprocal %38 : vector<1x32xf32> -> vector<1x32xf32>
    %40 = arith.mulf %31, %8 : vector<8x32xf32>
    %41 = vector.broadcast %39 : vector<1x32xf32> to vector<8x32xf32>
    %42 = arith.mulf %40, %41 : vector<8x32xf32>
    %43 = arith.mulf %19, %42 : vector<8x32xf32>
    %c0_7 = arith.constant 0 : index
    %c0_8 = arith.constant 0 : index
    %c0_9 = arith.constant 0 : index
    %44 = vector.load %arg3[%c0_7, %c0_8, %c0_9] : memref<1x8x32xf32, #tpu.memory_space<vmem>>, vector<1x8x32xf32>
    %45 = vector.shape_cast %44 : vector<1x8x32xf32> to vector<8x32xf32>
    %46 = vector.shape_cast %43 : vector<8x32xf32> to vector<1x8x32xf32>
    tpu.vector_store %arg3[%c0_7, %c0_8, %c0_9], %46 {strides = array<i32>} : memref<1x8x32xf32, #tpu.memory_space<vmem>>, vector<1x8x32xf32>,
    %47 = tpu.concatenate %43, %31, %34, %21 in 1 : vector<8x32xf32>, vector<8x32xf32>, vector<8x32xf32>, vector<8x32xf32> -> vector<8x128xf32>
    %c0_10 = arith.constant 0 : index
    %c0_11 = arith.constant 0 : index
    %48 = vector.load %arg4[%c0_10, %c0_11] : memref<8x128xf32, #tpu.memory_space<vmem>>, vector<8x128xf32>
    tpu.vector_store %arg4[%c0_10, %c0_11], %47 {strides = array<i32>} : memref<8x128xf32, #tpu.memory_space<vmem>>, vector<8x128xf32>,
    return
  }
  func.func @transform_0(%arg0: i32) -> (i32, i32, i32) {
    %c0_i32 = arith.constant 0 : i32
    %c0_i32_0 = arith.constant 0 : i32
    %c0_i32_1 = arith.constant 0 : i32
    return %arg0, %c0_i32, %c0_i32_0 : i32, i32, i32
  }
  func.func @transform_1(%arg0: i32) -> (i32, i32) {
    %c0_i32 = arith.constant 0 : i32
    %c0_i32_0 = arith.constant 0 : i32
    %c0_i32_1 = arith.constant 0 : i32
    return %c0_i32, %c0_i32_0 : i32, i32
  }
  func.func @transform_2(%arg0: i32) -> (i32, i32, i32) {
    %c0_i32 = arith.constant 0 : i32
    %c0_i32_0 = arith.constant 0 : i32
    %c0_i32_1 = arith.constant 0 : i32
    return %arg0, %c0_i32, %c0_i32_0 : i32, i32, i32
  }
  func.func @transform_3(%arg0: i32) -> (i32, i32) {
    %c0_i32 = arith.constant 0 : i32
    %c0_i32_0 = arith.constant 0 : i32
    %c0_i32_1 = arith.constant 0 : i32
    return %c0_i32, %c0_i32_0 : i32, i32
  }
}

module attributes {stable_mosaic.version = 11 : i64} {
  func.func @fc_kernel(%arg0: memref<128x32xf32, #tpu.memory_space<vmem>>, %arg1: memref<1x32xf32, #tpu.memory_space<vmem>>, %arg2: memref<1x1xf32, #tpu.memory_space<smem>>, %arg3: memref<128x1xf32, #tpu.memory_space<vmem>>) attributes {dimension_semantics = [], scalar_prefetch = 0 : i64, scratch_operands = 0 : i64, tpu.core_type = #tpu.core_type<tc>} {
    %c0 = arith.constant 0 : index
    %c0_0 = arith.constant 0 : index
    %0 = vector.load %arg0[%c0, %c0_0] : memref<128x32xf32, #tpu.memory_space<vmem>>, vector<128x32xf32>
    %c0_1 = arith.constant 0 : index
    %c0_2 = arith.constant 0 : index
    %1 = vector.load %arg1[%c0_1, %c0_2] : memref<1x32xf32, #tpu.memory_space<vmem>>, vector<1x32xf32>
    %2 = vector.broadcast %1 : vector<1x32xf32> to vector<128x32xf32>
    %3 = arith.mulf %0, %2 : vector<128x32xf32>
    %cst = arith.constant dense<0.000000e+00> : vector<128xf32>
    %4 = vector.multi_reduction <add>, %3, %cst [1] : vector<128x32xf32> to vector<128xf32>
    %5 = vector.shape_cast %4 : vector<128xf32> to vector<128x1xf32>
    %c0_3 = arith.constant 0 : index
    %c0_4 = arith.constant 0 : index
    %6 = memref.load %arg2[%c0_3, %c0_4] : memref<1x1xf32, #tpu.memory_space<smem>>
    %7 = vector.broadcast %6 : f32 to vector<128x1xf32>
    %8 = arith.addf %5, %7 : vector<128x1xf32>
    %c0_5 = arith.constant 0 : index
    %c0_6 = arith.constant 0 : index
    %9 = vector.load %arg3[%c0_5, %c0_6] : memref<128x1xf32, #tpu.memory_space<vmem>>, vector<128x1xf32>
    tpu.vector_store %arg3[%c0_5, %c0_6], %8 {strides = array<i32>} : memref<128x1xf32, #tpu.memory_space<vmem>>, vector<128x1xf32>,
    return
  }
}

module attributes {stable_mosaic.version = 11 : i64} {
  func.func @gates_kernel(%arg0: memref<128x16xf32, #tpu.memory_space<vmem>>, %arg1: memref<16x192xf32, #tpu.memory_space<vmem>>, %arg2: memref<1x192xf32, #tpu.memory_space<vmem>>, %arg3: memref<128x192xf32, #tpu.memory_space<vmem>>) attributes {dimension_semantics = [], scalar_prefetch = 0 : i64, scratch_operands = 0 : i64, tpu.core_type = #tpu.core_type<tc>} {
    %c0 = arith.constant 0 : index
    %c0_0 = arith.constant 0 : index
    %0 = vector.load %arg0[%c0, %c0_0] : memref<128x16xf32, #tpu.memory_space<vmem>>, vector<128x16xf32>
    %c0_1 = arith.constant 0 : index
    %c0_2 = arith.constant 0 : index
    %1 = vector.load %arg1[%c0_1, %c0_2] : memref<16x192xf32, #tpu.memory_space<vmem>>, vector<16x192xf32>
    %cst = arith.constant dense<0.000000e+00> : vector<128x192xf32>
    %2 = tpu.matmul %0, %1, %cst {dimension_numbers = #tpu.dot_dimension_numbers<[1], [0], [0], [1], [0, 0, 1, 1], [], []>, precision = #tpu.contract_precision<fp32>} : vector<128x16xf32>, vector<16x192xf32>, vector<128x192xf32> -> vector<128x192xf32>
    %c0_3 = arith.constant 0 : index
    %c0_4 = arith.constant 0 : index
    %3 = vector.load %arg2[%c0_3, %c0_4] : memref<1x192xf32, #tpu.memory_space<vmem>>, vector<1x192xf32>
    %4 = vector.broadcast %3 : vector<1x192xf32> to vector<128x192xf32>
    %5 = arith.addf %2, %4 : vector<128x192xf32>
    %c0_5 = arith.constant 0 : index
    %c0_6 = arith.constant 0 : index
    %6 = vector.load %arg3[%c0_5, %c0_6] : memref<128x192xf32, #tpu.memory_space<vmem>>, vector<128x192xf32>
    tpu.vector_store %arg3[%c0_5, %c0_6], %5 {strides = array<i32>} : memref<128x192xf32, #tpu.memory_space<vmem>>, vector<128x192xf32>,
    return
  }
}

</mosaic_0001>

<bundles_post_ra>
// kernel: _mlstm_sequence.5
= control target key start
LH: loop header
LB: loop body
LE: loop exit
PB: predicated region body
PF: predicated region fallthrough
CT: control target
= control target key end

     0   :  { %vm54_vm0 = vcmask 261120   ;;  %vm121_vm1 = vcmask 7168   ;;  %s297_s0 = inlined_call_operand.vmem [shape: f32[128,32], index: 0, kind: input, shape index: {}]   ;;  %s298_s1 = inlined_call_operand.vmem [shape: f32[1,32], index: 1, kind: input, shape index: {}]   ;;  %s299_s2 = inlined_call_operand.<no memory space> [shape: f32[1,1], index: 2, kind: input, shape index: {}]   ;;  %s300_s3 = inlined_call_operand.vmem [shape: f32[128,1], index: 3, kind: output, shape index: {}]  }
   0x1   :  { %v17_v0 = vld [vmem:[%s297_s0 + $0x10] sm:$0xff]  ;;  %v142_v1 = vld [vmem:[%s298_s1] ss:$0 sm:$0xff]  ;;  %v18_v5 = vld [vmem:[%s297_s0 + $0x18] sm:$0xff]  ;;  %v104_v49 = vstv %s299_s2 }
   0x2   :  { %v15_v2 = vld [vmem:[%s297_s0] sm:$0xff]  ;;  %v40_v3 = vmul.f32 %v142_v1, %v17_v0  ;;  %v16_v6 = vld [vmem:[%s297_s0 + $0x8] sm:$0xff]  ;;  %v41_v7 = vmul.f32 %v142_v1, %v18_v5  ;;  %v22_v17 = vld [vmem:[%s297_s0 + $0x38] sm:$0xff] }
   0x3   :  { %v38_v4 = vmul.f32 %v142_v1, %v15_v2  ;;  %v39_v8 = vmul.f32 %v142_v1, %v16_v6  ;;  %v20_v9 = vld [vmem:[%s297_s0 + $0x28] sm:$0xff]  ;;  %v19_v10 = vld [vmem:[%s297_s0 + $0x20] sm:$0xff]  ;;  %v21_v18 = vld [vmem:[%s297_s0 + $0x30] sm:$0xff]  ;;  %v45_v21 = vmul.f32 %v142_v1, %v22_v17 }
   0x4   :  { %v61_v11 = vsel %vm54_vm0, %v40_v3, 0.0  ;;  %v64_v13 = vsel %vm54_vm0, %v41_v7, 0.0  ;;  %v43_v15 = vmul.f32 %v142_v1, %v20_v9  ;;  %v42_v16 = vmul.f32 %v142_v1, %v19_v10  ;;  %v24_v23 = vld [vmem:[%s297_s0 + $0x48] sm:$0xff]  ;;  %v23_v24 = vld [vmem:[%s297_s0 + $0x40] sm:$0xff]  ;;  %v26_v29 = vld [vmem:[%s297_s0 + $0x58] sm:$0xff] }
   0x5   :  { %v55_v12 = vsel %vm54_vm0, %v38_v4, 0.0  ;;  %62 = vadd.xlane.f32.xlu1 %v61_v11  ;;  %v58_v14 = vsel %vm54_vm0, %v39_v8, 0.0  ;;  %v44_v22 = vmul.f32 %v142_v1, %v21_v18  ;;  %v76_v25 = vsel %vm54_vm0, %v45_v21, 0.0  ;;  %v25_v30 = vld [vmem:[%s297_s0 + $0x50] sm:$0xff]  ;;  %v28_v35 = vld [vmem:[%s297_s0 + $0x68] sm:$0xff]  ;;  %v27_v36 = vld [vmem:[%s297_s0 + $0x60] sm:$0xff] }
   0x6   :  { %56 = vadd.xlane.f32.xlu0 %v55_v12  ;;  %v70_v19 = vsel %vm54_vm0, %v43_v15, 0.0  ;;  %v67_v20 = vsel %vm54_vm0, %v42_v16, 0.0  ;;  %v47_v27 = vmul.f32 %v142_v1, %v24_v23  ;;  %v46_v28 = vmul.f32 %v142_v1, %v23_v24  ;;  %v30_v41 = vld [vmem:[%s297_s0 + $0x78] sm:$0xff]  ;;  %v29_v42 = vld [vmem:[%s297_s0 + $0x70] sm:$0xff] }
   0x7   :  { %v73_v26 = vsel %vm54_vm0, %v44_v22, 0.0  ;;  %v49_v33 = vmul.f32 %v142_v1, %v26_v29  ;;  %v48_v34 = vmul.f32 %v142_v1, %v25_v30  ;;  %v51_v39 = vmul.f32 %v142_v1, %v28_v35 }
   0x8   :  { %v82_v31 = vsel %vm54_vm0, %v47_v27, 0.0  ;;  %v79_v32 = vsel %vm54_vm0, %v46_v28, 0.0  ;;  %v50_v40 = vmul.f32 %v142_v1, %v27_v36  ;;  %v53_v45 = vmul.f32 %v142_v1, %v30_v41 }
   0x9   :  { %65 = vadd.xlane.f32.xlu1 %v64_v13  ;;  %v88_v37 = vsel %vm54_vm0, %v49_v33, 0.0  ;;  %v85_v38 = vsel %vm54_vm0, %v48_v34, 0.0  ;;  %v94_v43 = vsel %vm54_vm0, %v51_v39, 0.0  ;;  %v52_v46 = vmul.f32 %v142_v1, %v29_v42 }
   0xa   :  { %59 = vadd.xlane.f32.xlu0 %v58_v14  ;;  %v91_v44 = vsel %vm54_vm0, %v50_v40, 0.0  ;;  %v100_v47 = vsel %vm54_vm0, %v53_v45, 0.0 }
   0xb   :  { %v97_v48 = vsel %vm54_vm0, %v52_v46, 0.0 }
   0xd   :  { %71 = vadd.xlane.f32.xlu1 %v70_v19 }
   0xe   :  { %68 = vadd.xlane.f32.xlu0 %v67_v20 }
  0x11   :  { %77 = vadd.xlane.f32.xlu1 %v76_v25 }
  0x12   :  { %74 = vadd.xlane.f32.xlu0 %v73_v26 }
  0x15   :  { %83 = vadd.xlane.f32.xlu1 %v82_v31 }
  0x16   :  { %80 = vadd.xlane.f32.xlu0 %v79_v32 }
  0x19   :  { %89 = vadd.xlane.f32.xlu1 %v88_v37 }
  0x1a   :  { %86 = vadd.xlane.f32.xlu0 %v85_v38 }
  0x1d   :  { %95 = vadd.xlane.f32.xlu1 %v94_v43 }
  0x1e   :  { %92 = vadd.xlane.f32.xlu0 %v91_v44 }
  0x21   :  { %101 = vadd.xlane.f32.xlu1 %v100_v47 }
  0x22   :  { %98 = vadd.xlane.f32.xlu0 %v97_v48 }
  0x92   :  { %v63_v50 = vpop.xlane.xlu1 %62 }
  0x93   :  { %v57_v51 = vpop.xlane.xlu0 %56  ;;  %v107_v52 = vadd.f32 %v104_v49, %v63_v50 }
  0x94   :  { %v105_v53 = vadd.f32 %v104_v49, %v57_v51 }
  0x95   :  { %124 = vst.msk [vmem:[%s300_s3 + $0x10] sm:$0xff] %vm121_vm1, %v107_v52 }
  0x96   :  { %122 = vst.msk [vmem:[%s300_s3] sm:$0xff] %vm121_vm1, %v105_v53  ;;  %v66_v54 = vpop.xlane.xlu1 %65 }
  0x97   :  { %v60_v55 = vpop.xlane.xlu0 %59  ;;  %v108_v56 = vadd.f32 %v104_v49, %v66_v54 }
  0x98   :  { %v106_v57 = vadd.f32 %v104_v49, %v60_v55 }
  0x99   :  { %125 = vst.msk [vmem:[%s300_s3 + $0x18] sm:$0xff] %vm121_vm1, %v108_v56 }
  0x9a   :  { %123 = vst.msk [vmem:[%s300_s3 + $0x8] sm:$0xff] %vm121_vm1, %v106_v57  ;;  %v72_v58 = vpop.xlane.xlu1 %71 }
  0x9b   :  { %v69_v59 = vpop.xlane.xlu0 %68  ;;  %v110_v60 = vadd.f32 %v104_v49, %v72_v58 }
  0x9c   :  { %v109_v61 = vadd.f32 %v104_v49, %v69_v59 }
  0x9d   :  { %127 = vst.msk [vmem:[%s300_s3 + $0x28] sm:$0xff] %vm121_vm1, %v110_v60 }
  0x9e   :  { %126 = vst.msk [vmem:[%s300_s3 + $0x20] sm:$0xff] %vm121_vm1, %v109_v61  ;;  %v78_v62 = vpop.xlane.xlu1 %77 }
  0x9f   :  { %v75_v63 = vpop.xlane.xlu0 %74  ;;  %v112_v0 = vadd.f32 %v104_v49, %v78_v62 }
  0xa0   :  { %v111_v1 = vadd.f32 %v104_v49, %v75_v63 }
  0xa1   :  { %129 = vst.msk [vmem:[%s300_s3 + $0x38] sm:$0xff] %vm121_vm1, %v112_v0 }
  0xa2   :  { %128 = vst.msk [vmem:[%s300_s3 + $0x30] sm:$0xff] %vm121_vm1, %v111_v1  ;;  %v84_v2 = vpop.xlane.xlu1 %83 }
  0xa3   :  { %v81_v3 = vpop.xlane.xlu0 %80  ;;  %v114_v4 = vadd.f32 %v104_v49, %v84_v2 }
  0xa4   :  { %v113_v5 = vadd.f32 %v104_v49, %v81_v3 }
  0xa5   :  { %131 = vst.msk [vmem:[%s300_s3 + $0x48] sm:$0xff] %vm121_vm1, %v114_v4 }
  0xa6   :  { %130 = vst.msk [vmem:[%s300_s3 + $0x40] sm:$0xff] %vm121_vm1, %v113_v5  ;;  %v90_v6 = vpop.xlane.xlu1 %89 }
  0xa7   :  { %v87_v7 = vpop.xlane.xlu0 %86  ;;  %v116_v8 = vadd.f32 %v104_v49, %v90_v6 }
  0xa8   :  { %v115_v9 = vadd.f32 %v104_v49, %v87_v7 }
  0xa9   :  { %133 = vst.msk [vmem:[%s300_s3 + $0x58] sm:$0xff] %vm121_vm1, %v116_v8 }
  0xaa   :  { %132 = vst.msk [vmem:[%s300_s3 + $0x50] sm:$0xff] %vm121_vm1, %v115_v9  ;;  %v96_v10 = vpop.xlane.xlu1 %95 }
  0xab   :  { %v93_v11 = vpop.xlane.xlu0 %92  ;;  %v118_v12 = vadd.f32 %v104_v49, %v96_v10 }
  0xac   :  { %v117_v13 = vadd.f32 %v104_v49, %v93_v11 }
  0xad   :  { %135 = vst.msk [vmem:[%s300_s3 + $0x68] sm:$0xff] %vm121_vm1, %v118_v12 }
  0xae   :  { %134 = vst.msk [vmem:[%s300_s3 + $0x60] sm:$0xff] %vm121_vm1, %v117_v13  ;;  %v102_v14 = vpop.xlane.xlu1 %101 }
  0xaf   :  { %v99_v15 = vpop.xlane.xlu0 %98  ;;  %v120_v16 = vadd.f32 %v104_v49, %v102_v14 }
  0xb0   :  { %v119_v17 = vadd.f32 %v104_v49, %v99_v15 }
  0xb1   :  { %137 = vst.msk [vmem:[%s300_s3 + $0x78] sm:$0xff] %vm121_vm1, %v120_v16 }
  0xb2   :  { %136 = vst.msk [vmem:[%s300_s3 + $0x70] sm:$0xff] %vm121_vm1, %v119_v17 }

// kernel: _mlstm_sequence.4
= control target key start
LH: loop header
LB: loop body
LE: loop exit
PB: predicated region body
PF: predicated region fallthrough
CT: control target
= control target key end

     0   :  { %9 = vsyncpa [#allocation3], 0  ;;  %s1181_s12 = smov 0   ;;  %s1286_s0 = inlined_call_operand.vmem [shape: f32[16,8,192], index: 0, kind: input, shape index: {}]   ;;  %s1287_s1 = inlined_call_operand.vmem [shape: f32[8,128], index: 1, kind: input, shape index: {}]   ;;  %s1288_s2 = inlined_call_operand.vmem [shape: f32[16,8,32], index: 2, kind: output, shape index: {0}]   ;;  %s1289_s3 = inlined_call_operand.hbm [shape: f32[8,128], index: 3, kind: output, shape index: {1}]  }
   0x1 LB: > { %s1187_s13 = sadd.s32 4294967295, %s1155_s12   ;;  %p983_p0 = scmp.ge.s32.totalorder %s1155_s12, 1  ;;  %s1155_s12 = sphi %s1181_s12, %s15_s12  }
   0x2   : > { %p136_p1 = scmp.lt.s32.totalorder %s1155_s12, 17 }
   0x4   : > { %p137_p2 = pnand %p983_p0, %p136_p1 }
   0x5   : > { %p159_p3 = scmp.lt.s32.totalorder (!%p137_p2), %s1187_s13, 15  ;;  %p987_p4 = scmp.ne.s32.totalorder (!%p137_p2), %s1187_s13, 0 }
   0x6   : > { %140 = sbr.rel (%p137_p2) target bundleno = 1149 (0x47d), region = 28 }
   0xd   : > { %s160_s14 = scalar_select %p159_p3, %s1187_s13, 15 }
   0xe   : > { %171 = sbr.rel (%p987_p4) target bundleno = 21 (0x15), region = 32  ;;  %v172_v0 = vld [vmem:[%s1287_s1] sm:$0xff] (!%p987_p4) }
   0xf   : > { %s993_s15 = sshll.u32 %s160_s14, 4  ;;  %s986_s16 = sshll.u32 %s160_s14, 3  ;;  %173 = vst [vmem:[#allocation2] sm:$0xff] (!%p987_p4), %v172_v0 }
  0x10   : > { %s163_s19 = scalar_lea.vmem %s1286_s0, %s993_s15  ;;  %s1199_s22 = scalar_lea.vmem %s1288_s2, %s986_s16 }
  0x15 PF: > { %s1157_s25 = smov 64   ;;  %v1209_v2 = vld [vmem:[%s163_s19] sm:$0xff]  ;;  %s1158_s26 = smov 32   ;;  %vm199_vm0 = vcmask 261120   ;;  %v175_v12 = vld [vmem:[%s163_s19 + $0x8] sm:$0xff]  ;;  %vm265_vm1 = vcmask 64512  }
  0x16   : > { %v1205_v1 = vld [vmem:[#allocation2] sm:$0xff]  ;;  %s1159_s27 = smov 96   ;;  %vm897_vm2 = vcmask 523264   ;;  %s1160_s28 = smov [#allocation2]   ;;  %vm899_vm3 = vcmask 785408  }
  0x17   : > { %184 = vrot.lane.b32.xlu0 %v1205_v1, %s1157_s25  ;;  %s916_s29 = sshll.u32 %s1160_s28, 4  ;;  %p1096_p5 = scmp.eq.s32.totalorder %s1187_s13, 15  ;;  %s917_s29 = int_to_ptr.vmem [resolvable:$true] %s916_s29 }
  0x18   : > { %s1119_s30 = scalar_lea.vmem %s917_s29, 128  ;;  %p1126_p9 = scmp.lt.s32.totalorder %s917_s29, %s917_s29 }
  0x19   : > { %p1120_p6 = scmp.ne.s32.totalorder %s917_s29, %s1119_s30  ;;  %p1127_p10 = scmp.lt.s32.totalorder %s1119_s30, %s1119_s30 }
  0x1b   : > { %189 = vrot.lane.b32.xlu0 %v1209_v2, %s1158_s26  ;;  %p1121_p7 = pnand %p1120_p6, %p1096_p5  ;;  %p1128_p11 = por %p1127_p10, %p1126_p9 }
  0x1d   : > { %p1122_p8 = pneg %p1121_p7 }
  0x1f   : > { %p1129_p12 = pnand %p1128_p11, %p1122_p8 }
  0x89   : > { %v185_v3 = vpop.permute.xlu0 %184 }
  0x8a   : > { %v187_v4 = vadd.f32 %v185_v3, %v1209_v2 }
  0x8d   : > { %v190_v5 = vpop.permute.xlu0 %189 }
  0x8e   : > { %v192_v6 = vmax.f32 %v187_v4, %v190_v5 }
  0x90   : > { %194 = vrot.lane.b32.xlu1 %v192_v6, %s1159_s27  ;;  %v198_v8 = vsub.f32 %v187_v4, %v192_v6 }
  0x94   : > { %219 = vrot.lane.b32.xlu1 %v1205_v1, %s1159_s27 }
 0x102   : > { %v195_v7 = vpop.permute.xlu1 %194 }
 0x103   : > { %v197_v9 = vsub.f32 %v1209_v2, %v195_v7 }
 0x105   : > { %v200_v10 = vsel %vm199_vm0, %v197_v9, %v198_v8 }
 0x106   : > { %v201_v11 = vmul.f32 1.442695, %v200_v10  ;;  %v220_v15 = vpop.permute.xlu1 %219 }
 0x108   : > { %1111 = vpow2.f32 %v201_v11 }
 0x112   : > { %v1219_v13 = vpop.eup %1111 }
 0x113   : > { %v223_v14 = vmul.f32 %v1219_v13, %v175_v12  ;;  %v222_v16 = vmul.f32 %v1219_v13, %v220_v15 }
 0x115   : > { %225 = vrot.lane.b32.xlu0 %v223_v14, %s1158_s26 }
 0x133   : > { %229 = vxpose.xlu0.b32.start.end [1/1] (short) (narrow) %v190_v5, 32 }
 0x168   : > { %893 = vrot.lane.b32.xlu0 %v192_v6, %s1157_s25 }
 0x187   : > { %v226_v17 = vpop.permute.xlu0 %225 }
 0x188   : > { %v1225_v18 = vadd.f32 %v226_v17, %v222_v16 }
 0x18a   : > { %262 = vrot.lane.b32.xlu1 %v1225_v18, %s1159_s27 }
 0x18e   : > { %205 = vrot.lane.b32.xlu1 %v175_v12, %s1158_s26 }
 0x1b3   : > { %v245_v19 = vpop.trf.xlu0 }
 0x1b4   : > { %v267_v20 = vsel %vm265_vm1, %v245_v19, 0 }
 0x1b5   : > { %v1231_v21 = vand.u32 4294901760, %v267_v20 }
 0x1b7   : > { %v345_v22 = vsub.f32 %v267_v20, %v1231_v21  ;;  %v246_v26 = vpop.trf.xlu0 }
 0x1b8   : > { %v270_v28 = vsel %vm265_vm1, %v246_v26, 0 }
 0x1b9   : > { %v346_v23 = vand.u32 4294901760, %v345_v22  ;;  %v354_v30 = vand.u32 4294901760, %v270_v28 }
 0x1bb   : > { %1050 = vmatprep.mubr.f32.mxu0 %v346_v23  ;;  %v347_v24 = vsub.f32 %v345_v22, %v346_v23  ;;  %v247_v27 = vpop.trf.xlu0  ;;  %v355_v34 = vsub.f32 %v270_v28, %v354_v30  ;;  %v203_v28 = vmul.f32 %v1219_v13, %v1205_v1 }
 0x1bc   : > { %v273_v29 = vsel %vm265_vm1, %v247_v27, 0 }
 0x1bd   : > { %v348_v25 = vand.u32 4294901760, %v347_v24  ;;  %v364_v32 = vand.u32 4294901760, %v273_v29  ;;  %v356_v37 = vand.u32 4294901760, %v355_v34 }
 0x1bf   : > { %1026 = vmatprep.mubr.f32.mxu1 %v348_v25  ;;  %v248_v31 = vpop.trf.xlu0  ;;  %v365_v36 = vsub.f32 %v273_v29, %v364_v32  ;;  %v357_v41 = vsub.f32 %v355_v34, %v356_v37 }
 0x1c0   : > { %v276_v33 = vsel %vm265_vm1, %v248_v31, 0 }
 0x1c1   : > { %v374_v35 = vand.u32 4294901760, %v276_v33  ;;  %v366_v39 = vand.u32 4294901760, %v365_v36  ;;  %v358_v46 = vand.u32 4294901760, %v357_v41 }
 0x1c3   : > { %v375_v38 = vsub.f32 %v276_v33, %v374_v35  ;;  %v367_v43 = vsub.f32 %v365_v36, %v366_v39 }
 0x1c5   : > { %v376_v40 = vand.u32 4294901760, %v375_v38  ;;  %v368_v49 = vand.u32 4294901760, %v367_v43 }
 0x1c7   : > { %v377_v47 = vsub.f32 %v375_v38, %v376_v40 }
 0x1c9   : > { %v378_v52 = vand.u32 4294901760, %v377_v47 }
 0x1fc   : > { %v263_v42 = vpop.permute.xlu1 %262 }
 0x1fd   : > { %v279_v44 = vand.u32 4294901760, %v263_v42 }
 0x1ff   : > { %v386_v45 = vsub.f32 %v263_v42, %v279_v44  ;;  %1024 = vmatprep.subr.mxu1 %v279_v44  ;;  %1048 = vmatprep.subr.mxu0 %v279_v44 }
 0x200   : > { %1025 = vmatpush3.msra.mxu1 %v279_v44  ;;  %1049 = vmatpush3.msra.mxu0 %v279_v44  ;;  %v206_v48 = vpop.permute.xlu1 %205 }
 0x201   : > { %v208_v50 = vmul.f32 %v206_v48, %v175_v12  ;;  %1027 = vmatmul.mubr.f32.vlgmr.msra.gmra.mrb[0].mxu1 %v358_v46  ;;  %1051 = vmatmul.mubr.f32.vlgmr.msra.gmra.mrb[0].mxu0 %v356_v37  ;;  %v387_v51 = vand.u32 4294901760, %v386_v45 }
 0x202   : > { %1053 = vmatprep.mubr.f32.mxu0 %v366_v39  ;;  %1029 = vmatprep.mubr.f32.mxu1 %v368_v49 }
 0x203   : > { %1056 = vmatprep.subr.mxu0 %v387_v51  ;;  %210 = vrot.lane.b32.xlu1 %v208_v50, %s1159_s27  ;;  %v388_v53 = vsub.f32 %v386_v45, %v387_v51 }
 0x204   : > { %1057 = vmatpush3.msra.mxu0 %v387_v51 }
 0x205   : > { %1030 = vmatmul.mubr.f32.gmra.mrb[2].mxu1 %v378_v52  ;;  %1054 = vmatmul.mubr.f32.gmra.mrb[2].mxu0 %v376_v40  ;;  %v389_v54 = vand.u32 4294901760, %v388_v53  ;;  %v894_v40 = vpop.permute.xlu0 %893 }
 0x206   : > { %1064 = vmatprep.subr.mxu0 %v279_v44  ;;  %1034 = vmatprep.mubr.f32.mxu1 %v1231_v21 }
 0x207   : > { %1058 = vmatprep.mubr.f32.mxu0 %v1231_v21  ;;  %1032 = vmatprep.subr.mxu1 %v389_v54 }
 0x208   : > { %1033 = vmatpush3.msra.mxu1 %v389_v54 }
 0x209   : > { %1035 = vmatmul.mubr.f32.vlgmr.msra.gmra.mrb[0].mxu1 %v354_v30  ;;  %1040 = vmatprep.subr.mxu1 %v386_v45 }
 0x20a   : > { %1059 = vmatmul.mubr.f32.vlgmr.msra.gmra.mrb[0].mxu0 %v354_v30  ;;  %1037 = vmatprep.mubr.f32.mxu1 %v364_v32 }
 0x20b   : > { %1065 = vmatpush3.msra.mxu0 %v279_v44  ;;  %1041 = vmatpush3.msra.mxu1 %v386_v45 }
 0x20c   : > { %1061 = vmatprep.mubr.f32.mxu0 %v364_v32 }
 0x20d   : > { %1038 = vmatmul.mubr.f32.gmra.mrb[2].mxu1 %v374_v35 }
 0x20e   : > { %1062 = vmatmul.mubr.f32.gmra.mrb[2].mxu0 %v374_v35  ;;  %1042 = vmatprep.mubr.f32.mxu1 %v345_v22 }
 0x20f   : > { %1066 = vmatprep.mubr.f32.mxu0 %v1231_v21 }
 0x211   : > { %1043 = vmatmul.mubr.f32.vlgmr.msra.gmra.mrb[0].mxu1 %v355_v34  ;;  %v988_v34 = vmul.f32 -1.442695, %v1209_v2 }
 0x212   : > { %1067 = vmatmul.mubr.f32.vlgmr.msra.gmra.mrb[0].mxu0 %v354_v30  ;;  %1045 = vmatprep.mubr.f32.mxu1 %v365_v36 }
 0x213   : > { %1069 = vmatprep.mubr.f32.mxu0 %v364_v32 }
 0x215   : > { %1046 = vmatmul.mubr.f32.gmra.mrb[2].mxu1 %v375_v38 }
 0x216   : > { %1070 = vmatmul.mubr.f32.gmra.mrb[2].mxu0 %v374_v35 }
 0x275   : > { %v211_v55 = vpop.permute.xlu1 %210 }
 0x276   : > { %v213_v56 = vmul.f32 %v1219_v13, %v211_v55 }
 0x278   : > { %215 = vrot.lane.b32.xlu1 %v213_v56, %s1158_s26 }
 0x27c   : > { %871 = vrot.lane.b32.xlu1 %v1209_v2, %s1157_s25 }
 0x2e4   : > { %v1044_v57 = vpop.f32.mrb[0].mxu1 }
 0x2e5   : > { %v1068_v58 = vpop.f32.mrb[0].mxu0  ;;  %v548_v59 = vpop.f32.mrb[1].mxu1 }
 0x2e6   : > { %v1072_v60 = vadd.f32 %v1068_v58, %v1044_v57  ;;  %v831_v61 = vpop.f32.mrb[1].mxu0 }
 0x2e7   : > { %v1073_v62 = vadd.f32 %v831_v61, %v548_v59 }
 0x2e8   : > { %v854_v63 = vand.u32 2147483647, %v1072_v60  ;;  %v1047_v0 = vpop.f32.mrb[2].mxu1 }
 0x2e9   : > { %v853_v3 = vand.u32 2147483647, %v1073_v62  ;;  %v1071_v4 = vpop.f32.mrb[2].mxu0  ;;  %v562_v5 = vpop.f32.mrb[3].mxu1 }
 0x2ea   : > { %v858_v6 = vsel %vm199_vm0, %v854_v63, -inf  ;;  %v1074_v7 = vadd.f32 %v1071_v4, %v1047_v0  ;;  %v843_v8 = vpop.f32.mrb[3].mxu0  ;;  %v216_v27 = vpop.permute.xlu1 %215 }
 0x2eb   : > { %v857_v9 = vsel %vm199_vm0, %v853_v3, -inf  ;;  %v1075_v10 = vadd.f32 %v843_v8, %v562_v5  ;;  %v218_v30 = vadd.f32 %v216_v27, %v203_v28 }
 0x2ec   : > { %v861_v11 = vmax.f32 %v857_v9, %v858_v6  ;;  %v856_v12 = vand.u32 2147483647, %v1074_v7 }
 0x2ed   : > { %v855_v14 = vand.u32 2147483647, %v1075_v10 }
 0x2ee   : > { %v860_v15 = vsel %vm199_vm0, %v856_v12, -inf  ;;  %v872_v29 = vpop.permute.xlu1 %871 }
 0x2ef   : > { %v859_v16 = vsel %vm199_vm0, %v855_v14, -inf  ;;  %v874_v31 = vmul.f32 %v872_v29, %v218_v30 }
 0x2f0   : > { %v862_v17 = vmax.f32 %v859_v16, %v860_v15 }
 0x2f2   : > { %v863_v19 = vmax.f32 %v861_v11, %v862_v17 }
 0x2f4   : > { %v864_v20 = vrot.slane %v863_v19, 4 }
 0x2f6   : > { %v865_v21 = vmax.f32 %v863_v19, %v864_v20 }
 0x2f8   : > { %v866_v22 = vrot.slane %v865_v21, 2 }
 0x2fa   : > { %v867_v23 = vmax.f32 %v865_v21, %v866_v22 }
 0x2fc   : > { %v868_v24 = vrot.slane %v867_v23, 1 }
 0x2fe   : > { %v869_v25 = vmax.f32 %v867_v23, %v868_v24 }
 0x300   : > { %1113 = vrcp.f32 %v869_v25 }
 0x301   : > { %1115 = vpow2.f32 %v988_v34 }
 0x30a   : > { %v1114_v26 = vpop.eup %1113 }
 0x30b   : > { %876 = vrot.lane.b32.xlu1 %v1114_v26, %s1158_s26  ;;  %v1116_v35 = vpop.eup %1115 }
 0x30c   : > { %v180_v36 = vadd.f32 1.0, %v1116_v35 }
 0x30e   : > { %1117 = vrcp.f32 %v180_v36 }
 0x318   : > { %v1118_v37 = vpop.eup %1117 }
 0x37d   : > { %v877_v32 = vpop.permute.xlu1 %876 }
 0x37e   : > { %v879_v33 = vmul.f32 %v877_v32, %v874_v31 }
 0x380   : > { %881 = vrot.lane.b32.xlu1 %v879_v33, %s1158_s26 }
 0x3f2   : > { %v882_v38 = vpop.permute.xlu1 %881 }
 0x3f3   : > { %v884_v39 = vmul.f32 %v1118_v37, %v882_v38 }
 0x3f5   : > { %886 = vrot.lane.b32.xlu1 %v884_v39, %s1157_s25 }
 0x3f9   : > { %890 = vrot.lane.b32.xlu1 %v1225_v18, %s1158_s26 }
 0x467   : > { %v887_v1 = vpop.permute.xlu1 %886 }
 0x468   : > { %889 = vst.msk [vmem:[%s1199_s22] sm:$0xff] %vm199_vm0, %v887_v1  ;;  %v896_v2 = vsel %vm199_vm0, %v887_v1, %v218_v30 }
 0x46b   : > { %v891_v13 = vpop.permute.xlu1 %890 }
 0x46c   : > { %v898_v41 = vsel %vm897_vm2, %v896_v2, %v891_v13 }
 0x46d   : > { %v900_v42 = vsel %vm899_vm3, %v898_v41, %v894_v40 }
 0x46e   : > { %901 = vst [vmem:[#allocation2] sm:$0xff] %v900_v42 }
 0x46f   : > { %1132 = shalt.err (!%p1129_p12)
}
 0x470   : > { %s1133_s6 = scalar_lea.hbm %s1289_s3, 128 }
 0x471   : > { %p1134_p13 = scmp.ne.s32.totalorder %s1289_s3, %s1133_s6  ;;  %p1139_p2 = scmp.lt.u32.totalorder %s1133_s6, %s1289_s3 }
 0x473   : > { %p1135_p0 = pnand %p1134_p13, %p1096_p5 }
 0x475   : > { %p1136_p1 = pneg %p1135_p0 }
 0x477   : > { %p1141_p3 = pnand %p1139_p2, %p1136_p1 }
 0x479   : > { %1144 = shalt.err (!%p1141_p3)
}
 0x47a   : > { %1093 = dma.vmem_to_hbm [thread:$0]  (%p1096_p5), %s917_s29, 128, %s1289_s3, [#allocation3]  }
 0x47b   : > { %1150 = dma.done.wait (%p1096_p5), [#allocation3], 128  }
 0x47c   : > { %1152 = vsyncadd (%p1096_p5), [#allocation3], 4294967168 }
 0x47d PF: > { %s15_s12 = sadd.s32 1, %s1155_s12  }
 0x47e   : > { %p12_p4 = scmp.ge.s32.totalorder %s15_s12, 18  }
 0x480   :  { %14 = sbr.rel (!%p12_p4) target bundleno = 1 (0x1), region = 71 }
 0x487   :  { %936 = vsyncpa [#allocation3], 1 }
 0x488   :  { %938 = vsyncpa [#allocation3 + $0x1], 1 }

// kernel: _mlstm_sequence.3
= control target key start
LH: loop header
LB: loop body
LE: loop exit
PB: predicated region body
PF: predicated region fallthrough
CT: control target
= control target key end

     0   :  { %8 = vsyncpa [#allocation3], 0  ;;  %s2177_s0 = inlined_call_operand.hbm [shape: f32[128,16], index: 0, kind: input, shape index: {}]   ;;  %s2178_s1 = inlined_call_operand.hbm [shape: f32[16,192], index: 1, kind: input, shape index: {}]   ;;  %s2179_s2 = inlined_call_operand.vmem [shape: f32[1,192], index: 2, kind: input, shape index: {}]   ;;  %s2180_s3 = inlined_call_operand.vmem [shape: f32[128,192], index: 3, kind: output, shape index: {}]  }
   0x1   :  { %9 = vsyncpa [#allocation5], 0  ;;  %s1659_s12 = smov [#allocation2]   ;;  %s1611_s16 = scalar_lea.hbm %s2177_s0, 2048 }
   0x2   :  { %s15_s13 = sshll.u32 %s1659_s12, 4  ;;  %p1612_p0 = scmp.ne.s32.totalorder %s2177_s0, %s1611_s16  ;;  %s16_s13 = int_to_ptr.vmem [resolvable:$true] %s15_s13 }
   0x3   :  { %p1615_p1 = scmp.lt.u32.totalorder %s1611_s16, %s2177_s0 }
   0x5   :  { %p1617_p2 = pnand %p1615_p1, %p1612_p0 }
   0x7   :  { %1620 = shalt.err (!%p1617_p2)
}
   0x8   :  { %s1621_s21 = scalar_lea.vmem %s16_s13, 2048  ;;  %p1626_p4 = scmp.lt.s32.totalorder %s16_s13, %s16_s13 }
   0x9   :  { %p1622_p3 = scmp.ne.s32.totalorder %s16_s13, %s1621_s21  ;;  %p1627_p5 = scmp.lt.s32.totalorder %s1621_s21, %s1621_s21 }
   0xb   :  { %p1628_p6 = por %p1627_p5, %p1626_p4 }
   0xd   :  { %p1629_p7 = pnand %p1628_p6, %p1622_p3 }
   0xf   :  { %1632 = shalt.err (!%p1629_p7)
}
  0x10   :  { %s1660_s22 = smov 128   ;;  %s1661_s23 = smov 8  }
  0x11   :  { %21 = dma.hbm_to_vmem [thread:$0]  %s2177_s0, 2048, %s16_s13, [#allocation3], %s1660_s22, %s1660_s22, %s1661_s23  }
  0x12   :  { %s1662_s26 = smov [#allocation4]   ;;  %s1633_s30 = scalar_lea.hbm %s2178_s1, 512 }
  0x13   :  { %s27_s27 = sshll.u32 %s1662_s26, 4  ;;  %p1634_p8 = scmp.ne.s32.totalorder %s2178_s1, %s1633_s30  ;;  %s28_s27 = int_to_ptr.vmem [resolvable:$true] %s27_s27 }
  0x14   :  { %p1637_p9 = scmp.lt.u32.totalorder %s1633_s30, %s2178_s1 }
  0x16   :  { %p1639_p10 = pnand %p1637_p9, %p1634_p8 }
  0x18   :  { %1642 = shalt.err (!%p1639_p10)
}
  0x19   :  { %s1643_s8 = scalar_lea.vmem %s28_s27, 512  ;;  %p1648_p12 = scmp.lt.s32.totalorder %s28_s27, %s28_s27 }
  0x1a   :  { %p1644_p11 = scmp.ne.s32.totalorder %s28_s27, %s1643_s8  ;;  %p1649_p13 = scmp.lt.s32.totalorder %s1643_s8, %s1643_s8 }
  0x1c   :  { %p1650_p0 = por %p1649_p13, %p1648_p12 }
  0x1e   :  { %p1651_p1 = pnand %p1650_p0, %p1644_p11 }
  0x20   :  { %1654 = shalt.err (!%p1651_p1)
}
  0x21   :  { %s1663_s0 = smov 256   ;;  %s1664_s9 = smov 16  }
  0x22   :  { %33 = dma.hbm_to_vmem [thread:$0]  %s2178_s1, 512, %s28_s27, [#allocation5], %s1663_s0, %s1663_s0, %s1664_s9  }
  0x23   :  { %1655 = dma.done.wait [#allocation3], 2048  }
  0x24   :  { %1656 = vsyncadd [#allocation3], 4294965248 }
  0x25   :  { %1657 = dma.done.wait [#allocation5], 512  }
  0x26   :  { %1658 = vsyncadd [#allocation5], 4294966784  ;;  %v1665_v0 = vmov 0.0   ;;  %vm74_vm0 = vcmask 130048   ;;  %v59_v1 = vld [vmem:[#allocation4 + $0x8] sm:$0xff]  ;;  %v61_v2 = vld [vmem:[#allocation4 + $0x18] sm:$0xff] }
  0x27   :  { %834 = vmatprep.mubr.f32.mxu0 %v1665_v0  ;;  %191 = vmatprep.mubr.f32.mxu1 %v1665_v0  ;;  %v58_v3 = vld [vmem:[#allocation4] sm:$0xff]  ;;  %v123_v4 = vand.u32 4294901760, %v59_v1  ;;  %v127_v5 = vand.u32 4294901760, %v61_v2  ;;  %v60_v6 = vld [vmem:[#allocation4 + $0x10] sm:$0xff]  ;;  %v43_v9 = vld [vmem:[#allocation2 + $0x8] sm:$0xff]  ;;  %vm1350_vm1 = vcmask 523264  }
  0x28   :  { %v125_v7 = vand.u32 4294901760, %v58_v3  ;;  %v42_v8 = vld [vmem:[#allocation2] sm:$0xff]  ;;  %v129_v10 = vand.u32 4294901760, %v60_v6  ;;  %v79_v12 = vsel %vm74_vm0, %v43_v9, 0  ;;  %v44_v13 = vld [vmem:[#allocation2 + $0x10] sm:$0xff]  ;;  %v45_v34 = vld [vmem:[#allocation2 + $0x18] sm:$0xff] }
  0x29   :  { %v76_v11 = vsel %vm74_vm0, %v42_v8, 0  ;;  %v1388_v14 = vpack.c.bf16 %v127_v5, %v123_v4  ;;  %v1714_v15 = vsub.f32 %v59_v1, %v123_v4  ;;  %v1716_v16 = vsub.f32 %v61_v2, %v127_v5  ;;  %v46_v39 = vld [vmem:[#allocation2 + $0x20] sm:$0xff]  ;;  %v47_v48 = vld [vmem:[#allocation2 + $0x28] sm:$0xff]  ;;  %v48_v53 = vld [vmem:[#allocation2 + $0x30] sm:$0xff] }
  0x2a   :  { %v1718_v17 = vsub.f32 %v58_v3, %v125_v7  ;;  %v1720_v18 = vpack.c.bf16 %v129_v10, %v125_v7  ;;  %v1722_v19 = vsub.f32 %v60_v6, %v129_v10  ;;  %v1724_v20 = vand.u32 4294901760, %v76_v11  ;;  %v49_v1 = vld [vmem:[#allocation2 + $0x38] sm:$0xff]  ;;  %v50_v9 = vld [vmem:[#allocation2 + $0x40] sm:$0xff] }
  0x2b   :  { %v1726_v21 = vand.u32 4294901760, %v79_v12  ;;  %1401 = vmatprep.subr.bf16.mxu0 %v1388_v14  ;;  %1389 = vmatprep.subr.bf16.mxu1 %v1388_v14  ;;  %v370_v22 = vand.u32 4294901760, %v1714_v15  ;;  %v382_v23 = vand.u32 4294901760, %v1716_v16  ;;  %v82_v25 = vsel %vm74_vm0, %v44_v13, 0 }
  0x2c   :  { %v376_v24 = vand.u32 4294901760, %v1718_v17  ;;  %1403 = vmatpush1.bf16.msra.mxu0 %v1720_v18  ;;  %1391 = vmatpush1.bf16.msra.mxu1 %v1720_v18  ;;  %v1735_v26 = vsub.f32 %v76_v11, %v1724_v20  ;;  %v388_v28 = vand.u32 4294901760, %v1722_v19  ;;  %v1741_v29 = vand.u32 4294901760, %v82_v25 }
  0x2d   :  { %v1738_v27 = vsub.f32 %v79_v12, %v1726_v21  ;;  %v371_v30 = vsub.f32 %v1714_v15, %v370_v22  ;;  %v383_v31 = vsub.f32 %v1716_v16, %v382_v23  ;;  %v1404_v33 = vpack.c.bf16 %v382_v23, %v370_v22  ;;  %v51_v23 = vld [vmem:[#allocation2 + $0x48] sm:$0xff] }
  0x2e   :  { %v377_v32 = vsub.f32 %v1718_v17, %v376_v24  ;;  %v194_v35 = vand.u32 4294901760, %v1735_v26  ;;  %v389_v37 = vsub.f32 %v1722_v19, %v388_v28  ;;  %v1406_v38 = vpack.c.bf16 %v388_v28, %v376_v24 }
  0x2f   :  { %v205_v36 = vand.u32 4294901760, %v1738_v27  ;;  %v372_v40 = vand.u32 4294901760, %v371_v30  ;;  %v384_v41 = vand.u32 4294901760, %v383_v31  ;;  %1405 = vmatprep.subr.bf16.mxu0 %v1404_v33  ;;  %v1750_v43 = vsub.f32 %v82_v25, %v1741_v29 }
  0x30   :  { %v378_v42 = vand.u32 4294901760, %v377_v32  ;;  %838 = vmatmul.mubr.f32.vlgmr.msra.gmra.mrb[0].mxu0 %v194_v35  ;;  %v195_v44 = vsub.f32 %v1735_v26, %v194_v35  ;;  %v390_v45 = vand.u32 4294901760, %v389_v37  ;;  %v85_v47 = vsel %vm74_vm0, %v45_v34, 0  ;;  %v52_v32 = vld [vmem:[#allocation2 + $0x50] sm:$0xff] }
  0x31   :  { %v206_v46 = vsub.f32 %v1738_v27, %v205_v36  ;;  %843 = vmatprep.mubr.f32.mxu0 %v1665_v0  ;;  %v1392_v49 = vpack.c.bf16 %v384_v41, %v372_v40  ;;  %1407 = vmatpush1.bf16.msra.mxu0 %v1406_v38  ;;  %v216_v50 = vand.u32 4294901760, %v1750_v43  ;;  %v1757_v51 = vand.u32 4294901760, %v85_v47 }
  0x32   :  { %v88_v52 = vsel %vm74_vm0, %v46_v39, 0  ;;  %v196_v54 = vand.u32 4294901760, %v195_v44  ;;  %v1394_v55 = vpack.c.bf16 %v390_v45, %v378_v42  ;;  %1409 = vmatprep.subr.bf16.mxu0 %v1388_v14  ;;  %v91_v59 = vsel %vm74_vm0, %v47_v48, 0  ;;  %v54_v48 = vld [vmem:[#allocation2 + $0x60] sm:$0xff] }
  0x33   :  { %v1760_v56 = vand.u32 4294901760, %v88_v52  ;;  %1393 = vmatprep.subr.bf16.mxu1 %v1392_v49  ;;  %v207_v57 = vand.u32 4294901760, %v206_v46  ;;  %v1763_v58 = vsub.f32 %v85_v47, %v1757_v51  ;;  %v217_v60 = vsub.f32 %v1750_v43, %v216_v50 }
  0x34   :  { %197 = vmatmul.mubr.f32.vlgmr.msra.gmra.mrb[0].mxu1 %v196_v54  ;;  %847 = vmatmul.mubr.f32.gmra.mrb[2].mxu0 %v205_v36  ;;  %v1770_v62 = vand.u32 4294901760, %v91_v59  ;;  %v94_v63 = vsel %vm74_vm0, %v48_v53, 0  ;;  %v97_v4 = vsel %vm74_vm0, %v49_v1, 0  ;;  %v100_v11 = vsel %vm74_vm0, %v50_v9, 0 }
  0x35   :  { %v1768_v61 = vsub.f32 %v88_v52, %v1760_v56  ;;  %1395 = vmatpush1.bf16.msra.mxu1 %v1394_v55  ;;  %202 = vmatprep.mubr.f32.mxu1 %v1665_v0  ;;  %v227_v2 = vand.u32 4294901760, %v1763_v58  ;;  %v1776_v3 = vand.u32 4294901760, %v94_v63  ;;  %v218_v5 = vand.u32 4294901760, %v217_v60 }
  0x36   :  { %852 = vmatprep.mubr.f32.mxu0 %v1665_v0  ;;  %v1782_v8 = vsub.f32 %v91_v59, %v1770_v62  ;;  %v1786_v10 = vand.u32 4294901760, %v97_v4  ;;  %v1796_v24 = vand.u32 4294901760, %v100_v11  ;;  %v103_v33 = vsel %vm74_vm0, %v51_v23, 0 }
  0x37   :  { %v228_v6 = vsub.f32 %v1763_v58, %v227_v2  ;;  %v238_v7 = vand.u32 4294901760, %v1768_v61  ;;  %v1792_v22 = vsub.f32 %v94_v63, %v1776_v3  ;;  %v1396_v34 = vpack.c.bf16 %v1716_v16, %v1714_v15  ;;  %v53_v15 = vld [vmem:[#allocation2 + $0x58] sm:$0xff] }
  0x38   :  { %208 = vmatmul.mubr.f32.gmra.mrb[2].mxu1 %v207_v57  ;;  %856 = vmatmul.mubr.f32.gmra.mrb[4].mxu0 %v216_v50  ;;  %v249_v14 = vand.u32 4294901760, %v1782_v8  ;;  %v1801_v31 = vsub.f32 %v97_v4, %v1786_v10  ;;  %v1809_v35 = vsub.f32 %v100_v11, %v1796_v24  ;;  %v106_v36 = vsel %vm74_vm0, %v52_v32, 0  ;;  %v55_v57 = vld [vmem:[#allocation2 + $0x68] sm:$0xff] }
  0x39   :  { %213 = vmatprep.mubr.f32.mxu1 %v1665_v0  ;;  %861 = vmatprep.mubr.f32.mxu0 %v1665_v0  ;;  %v229_v12 = vand.u32 4294901760, %v228_v6  ;;  %v239_v13 = vsub.f32 %v1768_v61, %v238_v7  ;;  %v260_v30 = vand.u32 4294901760, %v1792_v22  ;;  %v1398_v37 = vpack.c.bf16 %v1722_v19, %v1718_v17 }
  0x3a   :  { %v250_v28 = vsub.f32 %v1782_v8, %v249_v14  ;;  %v271_v40 = vand.u32 4294901760, %v1801_v31  ;;  %v1816_v41 = vand.u32 4294901760, %v103_v33  ;;  %1397 = vmatprep.subr.bf16.mxu1 %v1396_v34  ;;  %v282_v16 = vand.u32 4294901760, %v1809_v35 }
  0x3b   :  { %v240_v25 = vand.u32 4294901760, %v239_v13  ;;  %v261_v39 = vsub.f32 %v1792_v22, %v260_v30  ;;  %v1821_v42 = vand.u32 4294901760, %v106_v36  ;;  %v109_v47 = vsel %vm74_vm0, %v53_v15, 0 }
  0x3c   :  { %219 = vmatmul.mubr.f32.gmra.mrb[4].mxu1 %v218_v5  ;;  %865 = vmatmul.mubr.f32.gmra.mrb[6].mxu0 %v227_v2  ;;  %v251_v38 = vand.u32 4294901760, %v250_v28  ;;  %v272_v45 = vsub.f32 %v1801_v31, %v271_v40  ;;  %v1825_v46 = vsub.f32 %v103_v33, %v1816_v41  ;;  %v283_v49 = vsub.f32 %v1809_v35, %v282_v16  ;;  %v56_v5 = vld [vmem:[#allocation2 + $0x70] sm:$0xff] }
  0x3d   :  { %224 = vmatprep.mubr.f32.mxu1 %v1665_v0  ;;  %870 = vmatprep.mubr.f32.mxu0 %v1665_v0  ;;  %v262_v44 = vand.u32 4294901760, %v261_v39  ;;  %v1832_v50 = vsub.f32 %v106_v36, %v1821_v42  ;;  %v1835_v54 = vand.u32 4294901760, %v109_v47  ;;  %v112_v55 = vsel %vm74_vm0, %v54_v48, 0 }
  0x3e   :  { %v273_v52 = vand.u32 4294901760, %v272_v45  ;;  %v293_v53 = vand.u32 4294901760, %v1825_v46  ;;  %v284_v59 = vand.u32 4294901760, %v283_v49  ;;  %v1845_v2 = vand.u32 4294901760, %v112_v55 }
  0x3f   :  { %v304_v60 = vand.u32 4294901760, %v1832_v50  ;;  %v1843_v1 = vsub.f32 %v109_v47, %v1835_v54  ;;  %v115_v4 = vsel %vm74_vm0, %v55_v57, 0  ;;  %v118_v13 = vsel %vm74_vm0, %v56_v5, 0 }
  0x40   :  { %230 = vmatmul.mubr.f32.gmra.mrb[6].mxu1 %v229_v12  ;;  %874 = vmatmul.mubr.f32.gmra.mrb[8].mxu0 %v238_v7  ;;  %v294_v63 = vsub.f32 %v1825_v46, %v293_v53  ;;  %v1851_v7 = vand.u32 4294901760, %v115_v4  ;;  %v1855_v12 = vsub.f32 %v112_v55, %v1845_v2  ;;  %v1860_v23 = vand.u32 4294901760, %v118_v13 }
  0x41   :  { %235 = vmatprep.mubr.f32.mxu1 %v1665_v0  ;;  %879 = vmatprep.mubr.f32.mxu0 %v1665_v0  ;;  %v305_v6 = vsub.f32 %v1832_v50, %v304_v60  ;;  %v315_v11 = vand.u32 4294901760, %v1843_v1  ;;  %v64_v17 = vlaneseq }
  0x42   :  { %v295_v9 = vand.u32 4294901760, %v294_v63  ;;  %v326_v32 = vand.u32 4294901760, %v1855_v12  ;;  %v1866_v33 = vsub.f32 %v115_v4, %v1851_v7 }
  0x43   :  { %v306_v28 = vand.u32 4294901760, %v305_v6 }
  0x44   :  { %241 = vmatmul.mubr.f32.gmra.mrb[8].mxu1 %v240_v25  ;;  %883 = vmatmul.mubr.f32.gmra.mrb[10].mxu0 %v249_v14  ;;  %v57_v14 = vld [vmem:[#allocation2 + $0x78] sm:$0xff]  ;;  %v337_v39 = vand.u32 4294901760, %v1866_v33 }
  0x45   :  { %246 = vmatprep.mubr.f32.mxu1 %v1665_v0  ;;  %888 = vmatprep.mubr.f32.mxu0 %v1665_v0  ;;  %v121_v25 = vsel %vm74_vm0, %v57_v14, 0 }
  0x46   :  { %v1870_v34 = vand.u32 4294901760, %v121_v25 }
  0x48   :  { %252 = vmatmul.mubr.f32.gmra.mrb[10].mxu1 %v251_v38  ;;  %892 = vmatmul.mubr.f32.gmra.mrb[12].mxu0 %v260_v30  ;;  %v316_v30 = vsub.f32 %v1843_v1, %v315_v11  ;;  %v327_v38 = vsub.f32 %v1855_v12, %v326_v32  ;;  %v1882_v45 = vsub.f32 %v121_v25, %v1870_v34 }
  0x49   :  { %257 = vmatprep.mubr.f32.mxu1 %v1665_v0  ;;  %897 = vmatprep.mubr.f32.mxu0 %v1665_v0 }
  0x4a   :  { %v317_v36 = vand.u32 4294901760, %v316_v30  ;;  %v328_v15 = vand.u32 4294901760, %v327_v38  ;;  %v359_v49 = vand.u32 4294901760, %v1882_v45 }
  0x4c   :  { %263 = vmatmul.mubr.f32.gmra.mrb[12].mxu1 %v262_v44  ;;  %901 = vmatmul.mubr.f32.gmra.mrb[14].mxu0 %v271_v40  ;;  %v1875_v40 = vsub.f32 %v118_v13, %v1860_v23 }
  0x4d   :  { %268 = vmatprep.mubr.f32.mxu1 %v1665_v0  ;;  %906 = vmatprep.mubr.f32.mxu0 %v1665_v0 }
  0x4e   :  { %v348_v44 = vand.u32 4294901760, %v1875_v40 }
  0x50   :  { %274 = vmatmul.mubr.f32.gmra.mrb[14].mxu1 %v273_v52  ;;  %910 = vmatmul.mubr.f32.gmra.mrb[16].mxu0 %v282_v16  ;;  %v338_v16 = vsub.f32 %v1866_v33, %v337_v39  ;;  %v349_v48 = vsub.f32 %v1875_v40, %v348_v44 }
  0x51   :  { %279 = vmatprep.mubr.f32.mxu1 %v1665_v0  ;;  %915 = vmatprep.mubr.f32.mxu0 %v1665_v0 }
  0x52   :  { %v339_v47 = vand.u32 4294901760, %v338_v16  ;;  %v350_v52 = vand.u32 4294901760, %v349_v48 }
  0x54   :  { %285 = vmatmul.mubr.f32.gmra.mrb[16].mxu1 %v284_v59  ;;  %919 = vmatmul.mubr.f32.gmra.mrb[18].mxu0 %v293_v53  ;;  %v360_v53 = vsub.f32 %v1882_v45, %v359_v49 }
  0x55   :  { %290 = vmatprep.mubr.f32.mxu1 %v1665_v0  ;;  %924 = vmatprep.mubr.f32.mxu0 %v1665_v0 }
  0x56   :  { %v361_v55 = vand.u32 4294901760, %v360_v53 }
  0x58   :  { %296 = vmatmul.mubr.f32.gmra.mrb[18].mxu1 %v295_v9  ;;  %928 = vmatmul.mubr.f32.gmra.mrb[20].mxu0 %v304_v60 }
  0x59   :  { %301 = vmatprep.mubr.f32.mxu1 %v1665_v0  ;;  %933 = vmatprep.mubr.f32.mxu0 %v1665_v0 }
  0x5c   :  { %307 = vmatmul.mubr.f32.gmra.mrb[20].mxu1 %v306_v28  ;;  %937 = vmatmul.mubr.f32.gmra.mrb[22].mxu0 %v315_v11 }
  0x5d   :  { %312 = vmatprep.mubr.f32.mxu1 %v1665_v0  ;;  %942 = vmatprep.mubr.f32.mxu0 %v1665_v0 }
  0x60   :  { %318 = vmatmul.mubr.f32.gmra.mrb[22].mxu1 %v317_v36  ;;  %946 = vmatmul.mubr.f32.gmra.mrb[24].mxu0 %v326_v32 }
  0x61   :  { %323 = vmatprep.mubr.f32.mxu1 %v1665_v0  ;;  %951 = vmatprep.mubr.f32.mxu0 %v1665_v0 }
  0x64   :  { %329 = vmatmul.mubr.f32.gmra.mrb[24].mxu1 %v328_v15  ;;  %955 = vmatmul.mubr.f32.gmra.mrb[26].mxu0 %v337_v39 }
  0x65   :  { %334 = vmatprep.mubr.f32.mxu1 %v1665_v0  ;;  %960 = vmatprep.mubr.f32.mxu0 %v1665_v0 }
  0x68   :  { %340 = vmatmul.mubr.f32.gmra.mrb[26].mxu1 %v339_v47  ;;  %964 = vmatmul.mubr.f32.gmra.mrb[28].mxu0 %v348_v44 }
  0x69   :  { %345 = vmatprep.mubr.f32.mxu1 %v1665_v0  ;;  %969 = vmatprep.mubr.f32.mxu0 %v1665_v0 }
  0x6c   :  { %351 = vmatmul.mubr.f32.gmra.mrb[28].mxu1 %v350_v52  ;;  %973 = vmatmul.mubr.f32.gmra.mrb[30].mxu0 %v359_v49 }
  0x6d   :  { %356 = vmatprep.mubr.f32.mxu1 %v1665_v0  ;;  %1055 = vmatprep.mubr.f32.mxu0 %v1665_v0 }
  0x70   :  { %362 = vmatmul.mubr.f32.gmra.mrb[30].mxu1 %v361_v55  ;;  %1057 = vmatmul.mubr.f32.vlgmr.msra.gmra.mrb[0].mxu0 %v1724_v20 }
  0x71   :  { %452 = vmatprep.mubr.f32.mxu1 %v1665_v0  ;;  %1062 = vmatprep.mubr.f32.mxu0 %v1665_v0 }
  0x72   :  { %1411 = vmatpush1.bf16.msra.mxu0 %v1720_v18  ;;  %v65_v18 = vshrl.u32 %v64_v17, 7 }
  0x74   :  { %454 = vmatmul.mubr.f32.vlgmr.msra.gmra.mrb[0].mxu1 %v1724_v20  ;;  %1064 = vmatmul.mubr.f32.gmra.mrb[2].mxu0 %v1726_v21  ;;  %v66_v19 = vsub.s32 0, %v65_v18 }
  0x75   :  { %1399 = vmatpush1.bf16.msra.mxu1 %v1398_v37  ;;  %459 = vmatprep.mubr.f32.mxu1 %v1665_v0 }
  0x76   :  { %1069 = vmatprep.mubr.f32.mxu0 %v1665_v0 }
  0x78   :  { %461 = vmatmul.mubr.f32.gmra.mrb[2].mxu1 %v1726_v21  ;;  %1071 = vmatmul.mubr.f32.gmra.mrb[4].mxu0 %v1741_v29 }
  0x79   :  { %466 = vmatprep.mubr.f32.mxu1 %v1665_v0  ;;  %1076 = vmatprep.mubr.f32.mxu0 %v1665_v0 }
  0x7c   :  { %468 = vmatmul.mubr.f32.gmra.mrb[4].mxu1 %v1741_v29  ;;  %1078 = vmatmul.mubr.f32.gmra.mrb[6].mxu0 %v1757_v51 }
  0x7d   :  { %473 = vmatprep.mubr.f32.mxu1 %v1665_v0  ;;  %1083 = vmatprep.mubr.f32.mxu0 %v1665_v0 }
  0x80   :  { %475 = vmatmul.mubr.f32.gmra.mrb[6].mxu1 %v1757_v51  ;;  %1085 = vmatmul.mubr.f32.gmra.mrb[8].mxu0 %v1760_v56 }
  0x81   :  { %480 = vmatprep.mubr.f32.mxu1 %v1665_v0  ;;  %1090 = vmatprep.mubr.f32.mxu0 %v1665_v0 }
  0x84   :  { %482 = vmatmul.mubr.f32.gmra.mrb[8].mxu1 %v1760_v56  ;;  %1092 = vmatmul.mubr.f32.gmra.mrb[10].mxu0 %v1770_v62 }
  0x85   :  { %487 = vmatprep.mubr.f32.mxu1 %v1665_v0  ;;  %1097 = vmatprep.mubr.f32.mxu0 %v1665_v0 }
  0x88   :  { %489 = vmatmul.mubr.f32.gmra.mrb[10].mxu1 %v1770_v62  ;;  %1099 = vmatmul.mubr.f32.gmra.mrb[12].mxu0 %v1776_v3 }
  0x89   :  { %494 = vmatprep.mubr.f32.mxu1 %v1665_v0  ;;  %1104 = vmatprep.mubr.f32.mxu0 %v1665_v0 }
  0x8c   :  { %496 = vmatmul.mubr.f32.gmra.mrb[12].mxu1 %v1776_v3  ;;  %1106 = vmatmul.mubr.f32.gmra.mrb[14].mxu0 %v1786_v10 }
  0x8d   :  { %501 = vmatprep.mubr.f32.mxu1 %v1665_v0  ;;  %1111 = vmatprep.mubr.f32.mxu0 %v1665_v0 }
  0x90   :  { %503 = vmatmul.mubr.f32.gmra.mrb[14].mxu1 %v1786_v10  ;;  %1113 = vmatmul.mubr.f32.gmra.mrb[16].mxu0 %v1796_v24 }
  0x91   :  { %508 = vmatprep.mubr.f32.mxu1 %v1665_v0  ;;  %1118 = vmatprep.mubr.f32.mxu0 %v1665_v0 }
  0x94   :  { %510 = vmatmul.mubr.f32.gmra.mrb[16].mxu1 %v1796_v24  ;;  %1120 = vmatmul.mubr.f32.gmra.mrb[18].mxu0 %v1816_v41 }
  0x95   :  { %515 = vmatprep.mubr.f32.mxu1 %v1665_v0  ;;  %1125 = vmatprep.mubr.f32.mxu0 %v1665_v0 }
  0x98   :  { %517 = vmatmul.mubr.f32.gmra.mrb[18].mxu1 %v1816_v41  ;;  %1127 = vmatmul.mubr.f32.gmra.mrb[20].mxu0 %v1821_v42 }
  0x99   :  { %522 = vmatprep.mubr.f32.mxu1 %v1665_v0  ;;  %1132 = vmatprep.mubr.f32.mxu0 %v1665_v0 }
  0x9c   :  { %524 = vmatmul.mubr.f32.gmra.mrb[20].mxu1 %v1821_v42  ;;  %1134 = vmatmul.mubr.f32.gmra.mrb[22].mxu0 %v1835_v54 }
  0x9d   :  { %529 = vmatprep.mubr.f32.mxu1 %v1665_v0  ;;  %1139 = vmatprep.mubr.f32.mxu0 %v1665_v0 }
  0xa0   :  { %531 = vmatmul.mubr.f32.gmra.mrb[22].mxu1 %v1835_v54  ;;  %1141 = vmatmul.mubr.f32.gmra.mrb[24].mxu0 %v1845_v2 }
  0xa1   :  { %536 = vmatprep.mubr.f32.mxu1 %v1665_v0  ;;  %1146 = vmatprep.mubr.f32.mxu0 %v1665_v0 }
  0xa4   :  { %538 = vmatmul.mubr.f32.gmra.mrb[24].mxu1 %v1845_v2  ;;  %1148 = vmatmul.mubr.f32.gmra.mrb[26].mxu0 %v1851_v7 }
  0xa5   :  { %543 = vmatprep.mubr.f32.mxu1 %v1665_v0  ;;  %1153 = vmatprep.mubr.f32.mxu0 %v1665_v0 }
  0xa8   :  { %545 = vmatmul.mubr.f32.gmra.mrb[26].mxu1 %v1851_v7  ;;  %1155 = vmatmul.mubr.f32.gmra.mrb[28].mxu0 %v1860_v23 }
  0xa9   :  { %550 = vmatprep.mubr.f32.mxu1 %v1665_v0  ;;  %1160 = vmatprep.mubr.f32.mxu0 %v1665_v0 }
  0xac   :  { %552 = vmatmul.mubr.f32.gmra.mrb[28].mxu1 %v1860_v23  ;;  %1162 = vmatmul.mubr.f32.gmra.mrb[30].mxu0 %v1870_v34 }
  0xad   :  { %557 = vmatprep.mubr.f32.mxu1 %v1665_v0  ;;  %1236 = vmatprep.mubr.f32.mxu0 %v1665_v0 }
  0xb0   :  { %559 = vmatmul.mubr.f32.gmra.mrb[30].mxu1 %v1870_v34  ;;  %1238 = vmatmul.mubr.f32.vlgmr.msra.gmra.mrb[0].mxu0 %v1724_v20  ;;  %v62_v20 = vld [vmem:[%s2179_s2] sm:$0x3] }
  0xb1   :  { %637 = vmatprep.mubr.f32.mxu1 %v1665_v0  ;;  %1243 = vmatprep.mubr.f32.mxu0 %v1665_v0 }
  0xb4   :  { %640 = vmatmul.mubr.f32.vlgmr.msra.gmra.mrb[0].mxu1 %v1735_v26  ;;  %1245 = vmatmul.mubr.f32.gmra.mrb[2].mxu0 %v1726_v21  ;;  %v70_v21 = vsub.s32 1, %v65_v18 }
  0xb5   :  { %645 = vmatprep.mubr.f32.mxu1 %v1665_v0  ;;  %1250 = vmatprep.mubr.f32.mxu0 %v1665_v0 }
  0xb8   :  { %648 = vmatmul.mubr.f32.gmra.mrb[2].mxu1 %v1738_v27  ;;  %1252 = vmatmul.mubr.f32.gmra.mrb[4].mxu0 %v1741_v29  ;;  %v2029_v29 = vrot.slane %v62_v20, %v66_v19 }
  0xb9   :  { %653 = vmatprep.mubr.f32.mxu1 %v1665_v0  ;;  %1257 = vmatprep.mubr.f32.mxu0 %v1665_v0 }
  0xbc   :  { %656 = vmatmul.mubr.f32.gmra.mrb[4].mxu1 %v1750_v43  ;;  %1259 = vmatmul.mubr.f32.gmra.mrb[6].mxu0 %v1757_v51  ;;  %v2031_v43 = vrot.slane %v62_v20, %v70_v21 }
  0xbd   :  { %661 = vmatprep.mubr.f32.mxu1 %v1665_v0  ;;  %1264 = vmatprep.mubr.f32.mxu0 %v1665_v0 }
  0xc0   :  { %664 = vmatmul.mubr.f32.gmra.mrb[6].mxu1 %v1763_v58  ;;  %1266 = vmatmul.mubr.f32.gmra.mrb[8].mxu0 %v1760_v56 }
  0xc1   :  { %669 = vmatprep.mubr.f32.mxu1 %v1665_v0  ;;  %1271 = vmatprep.mubr.f32.mxu0 %v1665_v0 }
  0xc4   :  { %672 = vmatmul.mubr.f32.gmra.mrb[8].mxu1 %v1768_v61  ;;  %1273 = vmatmul.mubr.f32.gmra.mrb[10].mxu0 %v1770_v62 }
  0xc5   :  { %677 = vmatprep.mubr.f32.mxu1 %v1665_v0  ;;  %1278 = vmatprep.mubr.f32.mxu0 %v1665_v0 }
  0xc8   :  { %680 = vmatmul.mubr.f32.gmra.mrb[10].mxu1 %v1782_v8  ;;  %1280 = vmatmul.mubr.f32.gmra.mrb[12].mxu0 %v1776_v3 }
  0xc9   :  { %685 = vmatprep.mubr.f32.mxu1 %v1665_v0  ;;  %1285 = vmatprep.mubr.f32.mxu0 %v1665_v0 }
  0xcc   :  { %688 = vmatmul.mubr.f32.gmra.mrb[12].mxu1 %v1792_v22  ;;  %1287 = vmatmul.mubr.f32.gmra.mrb[14].mxu0 %v1786_v10 }
  0xcd   :  { %693 = vmatprep.mubr.f32.mxu1 %v1665_v0  ;;  %1292 = vmatprep.mubr.f32.mxu0 %v1665_v0 }
  0xd0   :  { %696 = vmatmul.mubr.f32.gmra.mrb[14].mxu1 %v1801_v31  ;;  %1294 = vmatmul.mubr.f32.gmra.mrb[16].mxu0 %v1796_v24 }
  0xd1   :  { %701 = vmatprep.mubr.f32.mxu1 %v1665_v0  ;;  %1299 = vmatprep.mubr.f32.mxu0 %v1665_v0 }
  0xd4   :  { %704 = vmatmul.mubr.f32.gmra.mrb[16].mxu1 %v1809_v35  ;;  %1301 = vmatmul.mubr.f32.gmra.mrb[18].mxu0 %v1816_v41 }
  0xd5   :  { %709 = vmatprep.mubr.f32.mxu1 %v1665_v0  ;;  %1306 = vmatprep.mubr.f32.mxu0 %v1665_v0 }
  0xd8   :  { %712 = vmatmul.mubr.f32.gmra.mrb[18].mxu1 %v1825_v46  ;;  %1308 = vmatmul.mubr.f32.gmra.mrb[20].mxu0 %v1821_v42 }
  0xd9   :  { %717 = vmatprep.mubr.f32.mxu1 %v1665_v0  ;;  %1313 = vmatprep.mubr.f32.mxu0 %v1665_v0 }
  0xdc   :  { %720 = vmatmul.mubr.f32.gmra.mrb[20].mxu1 %v1832_v50  ;;  %1315 = vmatmul.mubr.f32.gmra.mrb[22].mxu0 %v1835_v54 }
  0xdd   :  { %725 = vmatprep.mubr.f32.mxu1 %v1665_v0  ;;  %1320 = vmatprep.mubr.f32.mxu0 %v1665_v0 }
  0xe0   :  { %728 = vmatmul.mubr.f32.gmra.mrb[22].mxu1 %v1843_v1  ;;  %1322 = vmatmul.mubr.f32.gmra.mrb[24].mxu0 %v1845_v2 }
  0xe1   :  { %733 = vmatprep.mubr.f32.mxu1 %v1665_v0  ;;  %1327 = vmatprep.mubr.f32.mxu0 %v1665_v0 }
  0xe4   :  { %736 = vmatmul.mubr.f32.gmra.mrb[24].mxu1 %v1855_v12  ;;  %1329 = vmatmul.mubr.f32.gmra.mrb[26].mxu0 %v1851_v7 }
  0xe5   :  { %741 = vmatprep.mubr.f32.mxu1 %v1665_v0  ;;  %1334 = vmatprep.mubr.f32.mxu0 %v1665_v0 }
  0xe8   :  { %744 = vmatmul.mubr.f32.gmra.mrb[26].mxu1 %v1866_v33  ;;  %1336 = vmatmul.mubr.f32.gmra.mrb[28].mxu0 %v1860_v23 }
  0xe9   :  { %749 = vmatprep.mubr.f32.mxu1 %v1665_v0  ;;  %1341 = vmatprep.mubr.f32.mxu0 %v1665_v0 }
  0xec   :  { %752 = vmatmul.mubr.f32.gmra.mrb[28].mxu1 %v1875_v40  ;;  %1343 = vmatmul.mubr.f32.gmra.mrb[30].mxu0 %v1870_v34 }
  0xed   :  { %757 = vmatprep.mubr.f32.mxu1 %v1665_v0 }
  0xf0   :  { %760 = vmatmul.mubr.f32.gmra.mrb[30].mxu1 %v1882_v45 }
 0x183   :  { %v1239_v26 = vpop.f32.mrb[0].mxu0 }
 0x184   :  { %v1241_v27 = vpop.f32.mrb[1].mxu0 }
 0x187   :  { %v641_v51 = vpop.f32.mrb[0].mxu1  ;;  %v1246_v56 = vpop.f32.mrb[2].mxu0 }
 0x188   :  { %v1412_v0 = vadd.f32 %v641_v51, %v2029_v29  ;;  %v643_v58 = vpop.f32.mrb[1].mxu1  ;;  %v1248_v61 = vpop.f32.mrb[3].mxu0 }
 0x189   :  { %v1414_v62 = vadd.f32 %v643_v58, %v2031_v43 }
 0x18a   :  { %v1413_v3 = vadd.f32 %v1412_v0, %v1239_v26 }
 0x18b   :  { %v1415_v8 = vadd.f32 %v1414_v62, %v1241_v27  ;;  %v649_v10 = vpop.f32.mrb[2].mxu1  ;;  %v1253_v22 = vpop.f32.mrb[4].mxu0 }
 0x18c   :  { %1349 = vst [vmem:[%s2180_s3] sm:$0xff] %v1413_v3  ;;  %v1416_v24 = vadd.f32 %v649_v10, %v2029_v29  ;;  %v651_v31 = vpop.f32.mrb[3].mxu1  ;;  %v1255_v35 = vpop.f32.mrb[5].mxu0 }
 0x18d   :  { %1351 = vst.msk [vmem:[%s2180_s3 + $0x8] sm:$0xff] %vm1350_vm1, %v1415_v8  ;;  %v1418_v37 = vadd.f32 %v651_v31, %v2031_v43 }
 0x18e   :  { %v1417_v41 = vadd.f32 %v1416_v24, %v1246_v56 }
 0x18f   :  { %v1419_v42 = vadd.f32 %v1418_v37, %v1248_v61  ;;  %v657_v46 = vpop.f32.mrb[4].mxu1  ;;  %v1260_v50 = vpop.f32.mrb[6].mxu0 }
 0x190   :  { %1352 = vst [vmem:[%s2180_s3 + $0x10] sm:$0xff] %v1417_v41  ;;  %v1420_v54 = vadd.f32 %v657_v46, %v2029_v29  ;;  %v659_v57 = vpop.f32.mrb[5].mxu1  ;;  %v1262_v59 = vpop.f32.mrb[7].mxu0 }
 0x191   :  { %1353 = vst.msk [vmem:[%s2180_s3 + $0x18] sm:$0xff] %vm1350_vm1, %v1419_v42  ;;  %v1422_v60 = vadd.f32 %v659_v57, %v2031_v43 }
 0x192   :  { %v1421_v63 = vadd.f32 %v1420_v54, %v1253_v22 }
 0x193   :  { %v1423_v1 = vadd.f32 %v1422_v60, %v1255_v35  ;;  %v665_v2 = vpop.f32.mrb[6].mxu1  ;;  %v1267_v4 = vpop.f32.mrb[8].mxu0 }
 0x194   :  { %1354 = vst [vmem:[%s2180_s3 + $0x20] sm:$0xff] %v1421_v63  ;;  %v1424_v5 = vadd.f32 %v665_v2, %v2029_v29  ;;  %v667_v6 = vpop.f32.mrb[7].mxu1  ;;  %v1269_v7 = vpop.f32.mrb[9].mxu0 }
 0x195   :  { %1355 = vst.msk [vmem:[%s2180_s3 + $0x28] sm:$0xff] %vm1350_vm1, %v1423_v1  ;;  %v1426_v9 = vadd.f32 %v667_v6, %v2031_v43 }
 0x196   :  { %v1425_v11 = vadd.f32 %v1424_v5, %v1260_v50 }
 0x197   :  { %v1427_v12 = vadd.f32 %v1426_v9, %v1262_v59  ;;  %v673_v13 = vpop.f32.mrb[8].mxu1  ;;  %v1274_v14 = vpop.f32.mrb[10].mxu0 }
 0x198   :  { %1356 = vst [vmem:[%s2180_s3 + $0x30] sm:$0xff] %v1425_v11  ;;  %v1428_v23 = vadd.f32 %v673_v13, %v2029_v29  ;;  %v675_v25 = vpop.f32.mrb[9].mxu1  ;;  %v1276_v28 = vpop.f32.mrb[11].mxu0 }
 0x199   :  { %1357 = vst.msk [vmem:[%s2180_s3 + $0x38] sm:$0xff] %vm1350_vm1, %v1427_v12  ;;  %v1430_v30 = vadd.f32 %v675_v25, %v2031_v43 }
 0x19a   :  { %v1429_v32 = vadd.f32 %v1428_v23, %v1267_v4 }
 0x19b   :  { %v1431_v33 = vadd.f32 %v1430_v30, %v1269_v7  ;;  %v681_v34 = vpop.f32.mrb[10].mxu1  ;;  %v1281_v36 = vpop.f32.mrb[12].mxu0 }
 0x19c   :  { %1358 = vst [vmem:[%s2180_s3 + $0x40] sm:$0xff] %v1429_v32  ;;  %v1432_v38 = vadd.f32 %v681_v34, %v2029_v29  ;;  %v683_v39 = vpop.f32.mrb[11].mxu1  ;;  %v1283_v40 = vpop.f32.mrb[13].mxu0 }
 0x19d   :  { %1359 = vst.msk [vmem:[%s2180_s3 + $0x48] sm:$0xff] %vm1350_vm1, %v1431_v33  ;;  %v1434_v15 = vadd.f32 %v683_v39, %v2031_v43 }
 0x19e   :  { %v1433_v16 = vadd.f32 %v1432_v38, %v1274_v14 }
 0x19f   :  { %v1435_v44 = vadd.f32 %v1434_v15, %v1276_v28  ;;  %v689_v45 = vpop.f32.mrb[12].mxu1  ;;  %v1288_v47 = vpop.f32.mrb[14].mxu0 }
 0x1a0   :  { %1360 = vst [vmem:[%s2180_s3 + $0x50] sm:$0xff] %v1433_v16  ;;  %v1436_v48 = vadd.f32 %v689_v45, %v2029_v29  ;;  %v691_v49 = vpop.f32.mrb[13].mxu1  ;;  %v1290_v52 = vpop.f32.mrb[15].mxu0 }
 0x1a1   :  { %1361 = vst.msk [vmem:[%s2180_s3 + $0x58] sm:$0xff] %vm1350_vm1, %v1435_v44  ;;  %v1438_v53 = vadd.f32 %v691_v49, %v2031_v43 }
 0x1a2   :  { %v1437_v55 = vadd.f32 %v1436_v48, %v1281_v36 }
 0x1a3   :  { %v1439_v17 = vadd.f32 %v1438_v53, %v1283_v40  ;;  %v697_v18 = vpop.f32.mrb[14].mxu1  ;;  %v1295_v19 = vpop.f32.mrb[16].mxu0 }
 0x1a4   :  { %1362 = vst [vmem:[%s2180_s3 + $0x60] sm:$0xff] %v1437_v55  ;;  %v1440_v20 = vadd.f32 %v697_v18, %v2029_v29  ;;  %v699_v21 = vpop.f32.mrb[15].mxu1  ;;  %v1297_v26 = vpop.f32.mrb[17].mxu0 }
 0x1a5   :  { %1363 = vst.msk [vmem:[%s2180_s3 + $0x68] sm:$0xff] %vm1350_vm1, %v1439_v17  ;;  %v1442_v27 = vadd.f32 %v699_v21, %v2031_v43 }
 0x1a6   :  { %v1441_v51 = vadd.f32 %v1440_v20, %v1288_v47 }
 0x1a7   :  { %v1443_v56 = vadd.f32 %v1442_v27, %v1290_v52  ;;  %v705_v0 = vpop.f32.mrb[16].mxu1  ;;  %v1302_v58 = vpop.f32.mrb[18].mxu0 }
 0x1a8   :  { %1364 = vst [vmem:[%s2180_s3 + $0x70] sm:$0xff] %v1441_v51  ;;  %v1444_v61 = vadd.f32 %v705_v0, %v2029_v29  ;;  %v707_v62 = vpop.f32.mrb[17].mxu1  ;;  %v1304_v3 = vpop.f32.mrb[19].mxu0 }
 0x1a9   :  { %1365 = vst.msk [vmem:[%s2180_s3 + $0x78] sm:$0xff] %vm1350_vm1, %v1443_v56  ;;  %v1446_v8 = vadd.f32 %v707_v62, %v2031_v43 }
 0x1aa   :  { %v1445_v10 = vadd.f32 %v1444_v61, %v1295_v19 }
 0x1ab   :  { %v1447_v22 = vadd.f32 %v1446_v8, %v1297_v26  ;;  %v713_v24 = vpop.f32.mrb[18].mxu1  ;;  %v1309_v31 = vpop.f32.mrb[20].mxu0 }
 0x1ac   :  { %1366 = vst [vmem:[%s2180_s3 + $0x80] sm:$0xff] %v1445_v10  ;;  %v1448_v35 = vadd.f32 %v713_v24, %v2029_v29  ;;  %v715_v37 = vpop.f32.mrb[19].mxu1  ;;  %v1311_v41 = vpop.f32.mrb[21].mxu0 }
 0x1ad   :  { %1367 = vst.msk [vmem:[%s2180_s3 + $0x88] sm:$0xff] %vm1350_vm1, %v1447_v22  ;;  %v1450_v42 = vadd.f32 %v715_v37, %v2031_v43 }
 0x1ae   :  { %v1449_v46 = vadd.f32 %v1448_v35, %v1302_v58 }
 0x1af   :  { %v1451_v50 = vadd.f32 %v1450_v42, %v1304_v3  ;;  %v721_v54 = vpop.f32.mrb[20].mxu1  ;;  %v1316_v57 = vpop.f32.mrb[22].mxu0 }
 0x1b0   :  { %1368 = vst [vmem:[%s2180_s3 + $0x90] sm:$0xff] %v1449_v46  ;;  %v1452_v59 = vadd.f32 %v721_v54, %v2029_v29  ;;  %v723_v60 = vpop.f32.mrb[21].mxu1  ;;  %v1318_v63 = vpop.f32.mrb[23].mxu0 }
 0x1b1   :  { %1369 = vst.msk [vmem:[%s2180_s3 + $0x98] sm:$0xff] %vm1350_vm1, %v1451_v50  ;;  %v1454_v1 = vadd.f32 %v723_v60, %v2031_v43 }
 0x1b2   :  { %v1453_v2 = vadd.f32 %v1452_v59, %v1309_v31 }
 0x1b3   :  { %v1455_v4 = vadd.f32 %v1454_v1, %v1311_v41  ;;  %v729_v5 = vpop.f32.mrb[22].mxu1  ;;  %v1323_v6 = vpop.f32.mrb[24].mxu0 }
 0x1b4   :  { %1370 = vst [vmem:[%s2180_s3 + $0xa0] sm:$0xff] %v1453_v2  ;;  %v1456_v7 = vadd.f32 %v729_v5, %v2029_v29  ;;  %v731_v9 = vpop.f32.mrb[23].mxu1  ;;  %v1325_v11 = vpop.f32.mrb[25].mxu0 }
 0x1b5   :  { %1371 = vst.msk [vmem:[%s2180_s3 + $0xa8] sm:$0xff] %vm1350_vm1, %v1455_v4  ;;  %v1458_v12 = vadd.f32 %v731_v9, %v2031_v43 }
 0x1b6   :  { %v1457_v13 = vadd.f32 %v1456_v7, %v1316_v57 }
 0x1b7   :  { %v1459_v14 = vadd.f32 %v1458_v12, %v1318_v63  ;;  %v737_v23 = vpop.f32.mrb[24].mxu1  ;;  %v1330_v25 = vpop.f32.mrb[26].mxu0 }
 0x1b8   :  { %1372 = vst [vmem:[%s2180_s3 + $0xb0] sm:$0xff] %v1457_v13  ;;  %v1460_v28 = vadd.f32 %v737_v23, %v2029_v29  ;;  %v739_v30 = vpop.f32.mrb[25].mxu1  ;;  %v1332_v32 = vpop.f32.mrb[27].mxu0 }
 0x1b9   :  { %1373 = vst.msk [vmem:[%s2180_s3 + $0xb8] sm:$0xff] %vm1350_vm1, %v1459_v14  ;;  %v1462_v33 = vadd.f32 %v739_v30, %v2031_v43 }
 0x1ba   :  { %v1461_v34 = vadd.f32 %v1460_v28, %v1323_v6 }
 0x1bb   :  { %v1463_v36 = vadd.f32 %v1462_v33, %v1325_v11  ;;  %v745_v38 = vpop.f32.mrb[26].mxu1  ;;  %v1337_v39 = vpop.f32.mrb[28].mxu0 }
 0x1bc   :  { %1374 = vst [vmem:[%s2180_s3 + $0xc0] sm:$0xff] %v1461_v34  ;;  %v1464_v40 = vadd.f32 %v745_v38, %v2029_v29  ;;  %v747_v15 = vpop.f32.mrb[27].mxu1  ;;  %v1339_v16 = vpop.f32.mrb[29].mxu0 }
 0x1bd   :  { %1375 = vst.msk [vmem:[%s2180_s3 + $0xc8] sm:$0xff] %vm1350_vm1, %v1463_v36  ;;  %v1466_v44 = vadd.f32 %v747_v15, %v2031_v43 }
 0x1be   :  { %v1465_v45 = vadd.f32 %v1464_v40, %v1330_v25 }
 0x1bf   :  { %v1467_v47 = vadd.f32 %v1466_v44, %v1332_v32  ;;  %v753_v48 = vpop.f32.mrb[28].mxu1  ;;  %v1344_v49 = vpop.f32.mrb[30].mxu0 }
 0x1c0   :  { %1376 = vst [vmem:[%s2180_s3 + $0xd0] sm:$0xff] %v1465_v45  ;;  %v1468_v52 = vadd.f32 %v753_v48, %v2029_v29  ;;  %v755_v53 = vpop.f32.mrb[29].mxu1  ;;  %v1346_v55 = vpop.f32.mrb[31].mxu0 }
 0x1c1   :  { %1377 = vst.msk [vmem:[%s2180_s3 + $0xd8] sm:$0xff] %vm1350_vm1, %v1467_v47  ;;  %v1470_v17 = vadd.f32 %v755_v53, %v2031_v43 }
 0x1c2   :  { %v1469_v18 = vadd.f32 %v1468_v52, %v1337_v39 }
 0x1c3   :  { %v1471_v19 = vadd.f32 %v1470_v17, %v1339_v16  ;;  %v761_v20 = vpop.f32.mrb[30].mxu1 }
 0x1c4   :  { %1378 = vst [vmem:[%s2180_s3 + $0xe0] sm:$0xff] %v1469_v18  ;;  %v1472_v21 = vadd.f32 %v761_v20, %v2029_v29  ;;  %v763_v26 = vpop.f32.mrb[31].mxu1 }
 0x1c5   :  { %1379 = vst.msk [vmem:[%s2180_s3 + $0xe8] sm:$0xff] %vm1350_vm1, %v1471_v19  ;;  %v1474_v27 = vadd.f32 %v763_v26, %v2031_v43 }
 0x1c6   :  { %v1473_v51 = vadd.f32 %v1472_v21, %v1344_v49 }
 0x1c7   :  { %v1475_v56 = vadd.f32 %v1474_v27, %v1346_v55 }
 0x1c8   :  { %1380 = vst [vmem:[%s2180_s3 + $0xf0] sm:$0xff] %v1473_v51 }
 0x1c9   :  { %1381 = vst.msk [vmem:[%s2180_s3 + $0xf8] sm:$0xff] %vm1350_vm1, %v1475_v56 }
 0x1ca   :  { %1386 = vsyncpa [#allocation3], 1 }
 0x1cb   :  { %1387 = vsyncpa [#allocation5], 1 }

</bundles_post_ra>
